<compile_context>
chip_gen: v5e
topology: v5e:2x2
jax: 0.10.0
libtpu: 0.0.40
codegen_flags: <defaults>
</compile_context>

<pallas_src>
import functools

import numpy as np
import jax
import jax.numpy as jnp
from jax import lax
from jax.experimental import pallas as pl
from jax.experimental.pallas import tpu as pltpu


# ----------------------------- fused Pallas kernel --------------------------

def _ghost_block_kernel(x_ref, w1_ref, c1_ref, bn1_ref,
                        w2_ref, c2_ref, bn2_ref, o_ref, *, W):
    """Fused ghostBlock forward for one batch block.

    Lane-dense layout: channels on sublanes, (batch_block * H * W) on lanes.
      x_ref  : (1, Cin,  L)     activation, L = B_blk*H*W
      w*_ref : (Cout, Cin)      grouped 1x1 conv weight, shuffle folded, rows
                                duplicated ([W_pw; W_pw]) for the two halves
      c*_ref : (9, Cout, L)     per-tap masked dw coefficients; identity rows
                                (centre tap = 1) for the pointwise half
      bn*_ref: (2, Cout, 1)     folded eval-mode BN [scale; shift]
      o_ref  : (1, Cout, L)
    """
    offs = tuple(dh * W + dw for dh in (-1, 0, 1) for dw in (-1, 0, 1))
    x = x_ref[0]                                   # (Cin, L), f32
    L = x.shape[1]

    def ghost(inp, w_ref, c_ref, bn_ref, relu6):
        # grouped 1x1 conv + channel shuffle folded into one dense weight;
        # lane-dense output: (Cout, Cin) x (Cin, L) -> (Cout, L) on the MXU.
        y = jnp.dot(w_ref[...], inp, preferred_element_type=jnp.float32)
        # depthwise 3x3 (padding=1) as 8 XLU lane rotations + masked taps;
        # the identity coefficient rows reproduce the channel concat.
        acc = c_ref[4] * y                         # centre tap, no shift
        for t, d in enumerate(offs):
            if d == 0:
                continue
            acc = acc + c_ref[t] * pltpu.roll(y, (-d) % L, axis=1)
        h = acc * bn_ref[0] + bn_ref[1]            # eval-mode BN
        return jnp.clip(h, 0.0, 6.0) if relu6 else h

    h1 = ghost(x, w1_ref, c1_ref, bn1_ref, relu6=True)     # ghost1 (ReLU6)
    h2 = ghost(h1, w2_ref, c2_ref, bn2_ref, relu6=False)   # ghost2
    o_ref[0] = (h2 + x).astype(o_ref.dtype)                # identity skip


def ghost_block_fwd(x_nchw, pk1, pk2, num_grid_blocks=1):
    """Whole ghostBlock (stride=1, downsample=False) in one pallas_call."""
    # TODO(synk): stride>1 / downsample=True branches (downsampleLayer /
    # downsampleSkip) are not exercised in this config and not implemented.
    N, Cin, H, W = x_nchw.shape
    HW = H * W
    w1, c1, bn1 = pk1
    w2, c2, bn2 = pk2
    nout = bn2.shape[1]
    assert nout == Cin, "identity residual requires nin == nout"
    nb = num_grid_blocks
    assert N % nb == 0, "batch must divide num_grid_blocks"
    b_blk = N // nb
    L = b_blk * HW
    assert c1.shape[-1] == L and c2.shape[-1] == L, \
        "coefficient planes were prepared for a different batch_block"

    # Fold the per-step batch slice into the lane axis -> one wide matmul per
    # 1x1 conv (tiny relayout, done once per call under jit).
    x = x_nchw.reshape(nb, b_blk, Cin, HW).transpose(0, 2, 1, 3).reshape(nb, Cin, L)

    kernel = functools.partial(_ghost_block_kernel, W=W)
    out = pl.pallas_call(
        kernel,
        out_shape=jax.ShapeDtypeStruct((nb, nout, L), jnp.float32),
        grid=(nb,),
        in_specs=[
            pl.BlockSpec((1, Cin, L), lambda n: (n, 0, 0)),   # activation
            pl.BlockSpec(w1.shape, lambda n: (0, 0)),         # ghost1 pw weight
            pl.BlockSpec(c1.shape, lambda n: (0, 0, 0)),      # ghost1 tap coeffs
            pl.BlockSpec(bn1.shape, lambda n: (0, 0, 0)),     # ghost1 BN [scale;shift]
            pl.BlockSpec(w2.shape, lambda n: (0, 0)),         # ghost2 pw weight
            pl.BlockSpec(c2.shape, lambda n: (0, 0, 0)),      # ghost2 tap coeffs
            pl.BlockSpec(bn2.shape, lambda n: (0, 0, 0)),     # ghost2 BN [scale;shift]
        ],
        out_specs=pl.BlockSpec((1, nout, L), lambda n: (n, 0, 0)),
        compiler_params=pltpu.CompilerParams(
            dimension_semantics=("parallel",)),               # megacore over batch blocks
    )(x, w1, c1, bn1, w2, c2, bn2)
    return out.reshape(nb, nout, b_blk, HW).transpose(0, 2, 1, 3).reshape(N, nout, H, W)


def default_grid_blocks(N):
    """One grid step on single-TC parts (v5e/v6e); 2-way batch grid on v7x."""
    try:
        kind = jax.devices()[0].device_kind.lower()
    except Exception:
        kind = ""
    if N >= 2 and N % 2 == 0 and any(tag in kind for tag in ("v7", "7x")):
        return 2
    return 1


# ----------------------------- parameters -----------------------------------

def make_ghost_params(key, nin, nout, groups=4):
    nghost = nout // 2
    k1, k2, k3, k4, k5, k6 = jax.random.split(key, 6)
    return dict(
        w_pw=0.3 * jax.random.normal(k1, (nghost, nin // groups, 1, 1), jnp.float32),
        w_dw=0.3 * jax.random.normal(k2, (nghost, 1, 3, 3), jnp.float32),
        gamma=1.0 + 0.1 * jax.random.normal(k3, (nout,), jnp.float32),
        beta=0.1 * jax.random.normal(k4, (nout,), jnp.float32),
        rmean=0.1 * jax.random.normal(k5, (nout,), jnp.float32),
        rvar=0.5 + 0.5 * jax.random.uniform(k6, (nout,), jnp.float32),
    )


def prep_ghost_params(p, nin, nout, H, W, batch_block, groups=4, eps=1e-5):
    """Fold grouped-conv structure, channel shuffle, channel concat, boundary
    masks and eval-mode BN into three per-module constants (host-side glue)."""
    nghost = nout // 2
    cin_g, cout_g = nin // groups, nghost // groups

    # grouped 1x1 conv as a dense (nghost, nin) weight
    w_pw = np.asarray(p["w_pw"])[:, :, 0, 0]                   # (nghost, cin_g)
    dense = np.zeros((nghost, nin), np.float32)
    for co in range(nghost):
        g = co // cout_g
        dense[co, g * cin_g:(g + 1) * cin_g] = w_pw[co]
    # channel shuffle folded into the weight rows
    cpg = nghost // groups
    src = (np.arange(nghost) % groups) * cpg + (np.arange(nghost) // groups)
    dense = dense[src]
    # duplicate rows: output channels [dw(pw), pw] both come from the same pw output
    w_dup = np.concatenate([dense, dense], axis=0)             # (nout, nin)

    # per-tap masked coefficient planes over the fused (batch_block*H*W) lane axis
    HW = H * W
    L = batch_block * HW
    hh, ww = np.arange(HW) // W, np.arange(HW) % W
    kdw = np.asarray(p["w_dw"])[:, 0].reshape(nghost, 9)       # row-major (dh, dw)
    coef = np.zeros((9, nout, L), np.float32)
    t = 0
    for dh in (-1, 0, 1):
        for dw in (-1, 0, 1):
            valid = ((hh + dh >= 0) & (hh + dh < H) &
                     (ww + dw >= 0) & (ww + dw < W)).astype(np.float32)
            valid = np.tile(valid, batch_block)                # (L,)
            coef[t, :nghost, :] = kdw[:, t][:, None] * valid[None, :]
            if dh == 0 and dw == 0:
                coef[t, nghost:, :] = 1.0                      # identity (pointwise half)
            t += 1

    # eval-mode BN folded to scale/shift over the concatenated channel order
    scale = np.asarray(p["gamma"]) / np.sqrt(np.asarray(p["rvar"]) + eps)
    shift = np.asarray(p["beta"]) - np.asarray(p["rmean"]) * scale
    bn = np.stack([scale, shift]).reshape(2, nout, 1).astype(np.float32)

    return (jnp.asarray(w_dup.astype(np.float32)),
            jnp.asarray(coef),
            jnp.asarray(bn))


# ----------------------------- pure-JAX reference ---------------------------

def _ref_ghost_module(x, p, relu6, groups=4, eps=1e-5):
    dn = ("NCHW", "OIHW", "NCHW")
    y = lax.conv_general_dilated(x, p["w_pw"], (1, 1), "VALID",
                                 feature_group_count=groups, dimension_numbers=dn)
    N, C, H, W = y.shape
    y = y.reshape(N, groups, C // groups, H, W).transpose(0, 2, 1, 3, 4).reshape(N, C, H, W)
    ghost = lax.conv_general_dilated(y, p["w_dw"], (1, 1), ((1, 1), (1, 1)),
                                     feature_group_count=C, dimension_numbers=dn)
    out = jnp.concatenate([ghost, y], axis=1)
    sc = (p["gamma"] / jnp.sqrt(p["rvar"] + eps))[None, :, None, None]
    sh = (p["beta"] - p["rmean"] * p["gamma"] / jnp.sqrt(p["rvar"] + eps))[None, :, None, None]
    out = out * sc + sh
    return jnp.clip(out, 0.0, 6.0) if relu6 else out


def _ref_ghost_block(x, p1, p2):
    h = _ref_ghost_module(x, p1, True)
    return _ref_ghost_module(h, p2, False) + x


# ----------------------------- main ------------------------------------------

if __name__ == "__main__":
    key = jax.random.PRNGKey(0)
    kx, kp1, kp2 = jax.random.split(key, 3)

    N, nin, nexpand, nout, H, W = 2, 8, 16, 8, 16, 16   # stride=1, downsample=False
    x_nchw = jax.random.normal(kx, (N, nin, H, W), jnp.float32)

    p1 = make_ghost_params(kp1, nin, nexpand)            # ghost1: nin -> nexpand
    p2 = make_ghost_params(kp2, nexpand, nout)           # ghost2: nexpand -> nout

    nb = default_grid_blocks(N)                          # 1 on v5e/v6e, 2 on v7x
    b_blk = N // nb
    pk1 = prep_ghost_params(p1, nin, nexpand, H, W, b_blk)
    pk2 = prep_ghost_params(p2, nexpand, nout, H, W, b_blk)

    fwd = jax.jit(functools.partial(ghost_block_fwd, num_grid_blocks=nb))
    out = jax.block_until_ready(fwd(x_nchw, pk1, pk2))

    ref = _ref_ghost_block(x_nchw, p1, p2)
    err = float(jnp.max(jnp.abs(out - ref)))
    assert jnp.allclose(out, ref, atol=1e-4, rtol=1e-4), f"max abs err {err}"
    print("KERNEL_OK")
</pallas_src>

<mosaic_0001>
module attributes {stable_mosaic.version = 11 : i64} {
  func.func @_ghost_block_kernel(%arg0: i32, %arg1: memref<1x8x512xf32, #tpu.memory_space<vmem>>, %arg2: memref<16x8xf32, #tpu.memory_space<vmem>>, %arg3: memref<9x16x512xf32, #tpu.memory_space<vmem>>, %arg4: memref<2x16x1xf32, #tpu.memory_space<vmem>>, %arg5: memref<8x16xf32, #tpu.memory_space<vmem>>, %arg6: memref<9x8x512xf32, #tpu.memory_space<vmem>>, %arg7: memref<2x8x1xf32, #tpu.memory_space<vmem>>, %arg8: memref<1x8x512xf32, #tpu.memory_space<vmem>>) attributes {dimension_semantics = [#tpu.dimension_semantics<parallel>], iteration_bounds = array<i64: 1>, scalar_prefetch = 0 : i64, scratch_operands = 0 : i64, tpu.core_type = #tpu.core_type<tc>, window_params = [{transform_indices = @transform_0, window_bounds = array<i64: 1, 8, 512>}, {pipeline_mode = #tpu.pipeline_mode<synchronous>, transform_indices = @transform_1, window_bounds = array<i64: 16, 8>}, {pipeline_mode = #tpu.pipeline_mode<synchronous>, transform_indices = @transform_2, window_bounds = array<i64: 9, 16, 512>}, {pipeline_mode = #tpu.pipeline_mode<synchronous>, transform_indices = @transform_3, window_bounds = array<i64: 2, 16, 1>}, {pipeline_mode = #tpu.pipeline_mode<synchronous>, transform_indices = @transform_4, window_bounds = array<i64: 8, 16>}, {pipeline_mode = #tpu.pipeline_mode<synchronous>, transform_indices = @transform_5, window_bounds = array<i64: 9, 8, 512>}, {pipeline_mode = #tpu.pipeline_mode<synchronous>, transform_indices = @transform_6, window_bounds = array<i64: 2, 8, 1>}, {transform_indices = @transform_7, window_bounds = array<i64: 1, 8, 512>}]} {
    %c0 = arith.constant 0 : index
    %c0_0 = arith.constant 0 : index
    %c0_1 = arith.constant 0 : index
    %0 = vector.load %arg1[%c0, %c0_0, %c0_1] : memref<1x8x512xf32, #tpu.memory_space<vmem>>, vector<1x8x512xf32>
    %1 = vector.shape_cast %0 : vector<1x8x512xf32> to vector<8x512xf32>
    %c0_2 = arith.constant 0 : index
    %c0_3 = arith.constant 0 : index
    %2 = vector.load %arg2[%c0_2, %c0_3] : memref<16x8xf32, #tpu.memory_space<vmem>>, vector<16x8xf32>
    %cst = arith.constant dense<0.000000e+00> : vector<16x512xf32>
    %3 = tpu.matmul %2, %1, %cst {dimension_numbers = #tpu.dot_dimension_numbers<[1], [0], [0], [1], [0, 0, 1, 1], [], []>} : vector<16x8xf32>, vector<8x512xf32>, vector<16x512xf32> -> vector<16x512xf32>
    %c4 = arith.constant 4 : index
    %c0_4 = arith.constant 0 : index
    %c0_5 = arith.constant 0 : index
    %4 = vector.load %arg3[%c4, %c0_4, %c0_5] : memref<9x16x512xf32, #tpu.memory_space<vmem>>, vector<1x16x512xf32>
    %5 = vector.shape_cast %4 : vector<1x16x512xf32> to vector<16x512xf32>
    %6 = arith.mulf %5, %3 : vector<16x512xf32>
    %c0_6 = arith.constant 0 : index
    %c0_7 = arith.constant 0 : index
    %c0_8 = arith.constant 0 : index
    %7 = vector.load %arg3[%c0_6, %c0_7, %c0_8] : memref<9x16x512xf32, #tpu.memory_space<vmem>>, vector<1x16x512xf32>
    %8 = vector.shape_cast %7 : vector<1x16x512xf32> to vector<16x512xf32>
    %c17_i32 = arith.constant 17 : i32
    %9 = tpu.dynamic_rotate %3 by %c17_i32 dim 1 : vector<16x512xf32>, i32 -> vector<16x512xf32>
    %10 = arith.mulf %8, %9 : vector<16x512xf32>
    %11 = arith.addf %6, %10 : vector<16x512xf32>
    %c1 = arith.constant 1 : index
    %c0_9 = arith.constant 0 : index
    %c0_10 = arith.constant 0 : index
    %12 = vector.load %arg3[%c1, %c0_9, %c0_10] : memref<9x16x512xf32, #tpu.memory_space<vmem>>, vector<1x16x512xf32>
    %13 = vector.shape_cast %12 : vector<1x16x512xf32> to vector<16x512xf32>
    %c16_i32 = arith.constant 16 : i32
    %14 = tpu.dynamic_rotate %3 by %c16_i32 dim 1 : vector<16x512xf32>, i32 -> vector<16x512xf32>
    %15 = arith.mulf %13, %14 : vector<16x512xf32>
    %16 = arith.addf %11, %15 : vector<16x512xf32>
    %c2 = arith.constant 2 : index
    %c0_11 = arith.constant 0 : index
    %c0_12 = arith.constant 0 : index
    %17 = vector.load %arg3[%c2, %c0_11, %c0_12] : memref<9x16x512xf32, #tpu.memory_space<vmem>>, vector<1x16x512xf32>
    %18 = vector.shape_cast %17 : vector<1x16x512xf32> to vector<16x512xf32>
    %c15_i32 = arith.constant 15 : i32
    %19 = tpu.dynamic_rotate %3 by %c15_i32 dim 1 : vector<16x512xf32>, i32 -> vector<16x512xf32>
    %20 = arith.mulf %18, %19 : vector<16x512xf32>
    %21 = arith.addf %16, %20 : vector<16x512xf32>
    %c3 = arith.constant 3 : index
    %c0_13 = arith.constant 0 : index
    %c0_14 = arith.constant 0 : index
    %22 = vector.load %arg3[%c3, %c0_13, %c0_14] : memref<9x16x512xf32, #tpu.memory_space<vmem>>, vector<1x16x512xf32>
    %23 = vector.shape_cast %22 : vector<1x16x512xf32> to vector<16x512xf32>
    %c1_i32 = arith.constant 1 : i32
    %24 = tpu.dynamic_rotate %3 by %c1_i32 dim 1 : vector<16x512xf32>, i32 -> vector<16x512xf32>
    %25 = arith.mulf %23, %24 : vector<16x512xf32>
    %26 = arith.addf %21, %25 : vector<16x512xf32>
    %c5 = arith.constant 5 : index
    %c0_15 = arith.constant 0 : index
    %c0_16 = arith.constant 0 : index
    %27 = vector.load %arg3[%c5, %c0_15, %c0_16] : memref<9x16x512xf32, #tpu.memory_space<vmem>>, vector<1x16x512xf32>
    %28 = vector.shape_cast %27 : vector<1x16x512xf32> to vector<16x512xf32>
    %c511_i32 = arith.constant 511 : i32
    %29 = tpu.dynamic_rotate %3 by %c511_i32 dim 1 : vector<16x512xf32>, i32 -> vector<16x512xf32>
    %30 = arith.mulf %28, %29 : vector<16x512xf32>
    %31 = arith.addf %26, %30 : vector<16x512xf32>
    %c6 = arith.constant 6 : index
    %c0_17 = arith.constant 0 : index
    %c0_18 = arith.constant 0 : index
    %32 = vector.load %arg3[%c6, %c0_17, %c0_18] : memref<9x16x512xf32, #tpu.memory_space<vmem>>, vector<1x16x512xf32>
    %33 = vector.shape_cast %32 : vector<1x16x512xf32> to vector<16x512xf32>
    %c497_i32 = arith.constant 497 : i32
    %34 = tpu.dynamic_rotate %3 by %c497_i32 dim 1 : vector<16x512xf32>, i32 -> vector<16x512xf32>
    %35 = arith.mulf %33, %34 : vector<16x512xf32>
    %36 = arith.addf %31, %35 : vector<16x512xf32>
    %c7 = arith.constant 7 : index
    %c0_19 = arith.constant 0 : index
    %c0_20 = arith.constant 0 : index
    %37 = vector.load %arg3[%c7, %c0_19, %c0_20] : memref<9x16x512xf32, #tpu.memory_space<vmem>>, vector<1x16x512xf32>
    %38 = vector.shape_cast %37 : vector<1x16x512xf32> to vector<16x512xf32>
    %c496_i32 = arith.constant 496 : i32
    %39 = tpu.dynamic_rotate %3 by %c496_i32 dim 1 : vector<16x512xf32>, i32 -> vector<16x512xf32>
    %40 = arith.mulf %38, %39 : vector<16x512xf32>
    %41 = arith.addf %36, %40 : vector<16x512xf32>
    %c8 = arith.constant 8 : index
    %c0_21 = arith.constant 0 : index
    %c0_22 = arith.constant 0 : index
    %42 = vector.load %arg3[%c8, %c0_21, %c0_22] : memref<9x16x512xf32, #tpu.memory_space<vmem>>, vector<1x16x512xf32>
    %43 = vector.shape_cast %42 : vector<1x16x512xf32> to vector<16x512xf32>
    %c495_i32 = arith.constant 495 : i32
    %44 = tpu.dynamic_rotate %3 by %c495_i32 dim 1 : vector<16x512xf32>, i32 -> vector<16x512xf32>
    %45 = arith.mulf %43, %44 : vector<16x512xf32>
    %46 = arith.addf %41, %45 : vector<16x512xf32>
    %c0_23 = arith.constant 0 : index
    %c0_24 = arith.constant 0 : index
    %c0_25 = arith.constant 0 : index
    %47 = vector.load %arg4[%c0_23, %c0_24, %c0_25] : memref<2x16x1xf32, #tpu.memory_space<vmem>>, vector<1x16x1xf32>
    %48 = vector.shape_cast %47 : vector<1x16x1xf32> to vector<16x1xf32>
    %49 = vector.broadcast %48 : vector<16x1xf32> to vector<16x512xf32>
    %50 = arith.mulf %46, %49 : vector<16x512xf32>
    %c1_26 = arith.constant 1 : index
    %c0_27 = arith.constant 0 : index
    %c0_28 = arith.constant 0 : index
    %51 = vector.load %arg4[%c1_26, %c0_27, %c0_28] : memref<2x16x1xf32, #tpu.memory_space<vmem>>, vector<1x16x1xf32>
    %52 = vector.shape_cast %51 : vector<1x16x1xf32> to vector<16x1xf32>
    %53 = vector.broadcast %52 : vector<16x1xf32> to vector<16x512xf32>
    %54 = arith.addf %50, %53 : vector<16x512xf32>
    %cst_29 = arith.constant 0.000000e+00 : f32
    %cst_30 = arith.constant 6.000000e+00 : f32
    %55 = vector.broadcast %cst_29 : f32 to vector<16x512xf32>
    %56 = arith.maximumf %55, %54 : vector<16x512xf32>
    %57 = vector.broadcast %cst_30 : f32 to vector<16x512xf32>
    %58 = arith.minimumf %57, %56 : vector<16x512xf32>
    %c0_31 = arith.constant 0 : index
    %c0_32 = arith.constant 0 : index
    %59 = vector.load %arg5[%c0_31, %c0_32] : memref<8x16xf32, #tpu.memory_space<vmem>>, vector<8x16xf32>
    %cst_33 = arith.constant dense<0.000000e+00> : vector<8x512xf32>
    %60 = tpu.matmul %59, %58, %cst_33 {dimension_numbers = #tpu.dot_dimension_numbers<[1], [0], [0], [1], [0, 0, 1, 1], [], []>} : vector<8x16xf32>, vector<16x512xf32>, vector<8x512xf32> -> vector<8x512xf32>
    %c4_34 = arith.constant 4 : index
    %c0_35 = arith.constant 0 : index
    %c0_36 = arith.constant 0 : index
    %61 = vector.load %arg6[%c4_34, %c0_35, %c0_36] : memref<9x8x512xf32, #tpu.memory_space<vmem>>, vector<1x8x512xf32>
    %62 = vector.shape_cast %61 : vector<1x8x512xf32> to vector<8x512xf32>
    %63 = arith.mulf %62, %60 : vector<8x512xf32>
    %c0_37 = arith.constant 0 : index
    %c0_38 = arith.constant 0 : index
    %c0_39 = arith.constant 0 : index
    %64 = vector.load %arg6[%c0_37, %c0_38, %c0_39] : memref<9x8x512xf32, #tpu.memory_space<vmem>>, vector<1x8x512xf32>
    %65 = vector.shape_cast %64 : vector<1x8x512xf32> to vector<8x512xf32>
    %c17_i32_40 = arith.constant 17 : i32
    %66 = tpu.dynamic_rotate %60 by %c17_i32_40 dim 1 : vector<8x512xf32>, i32 -> vector<8x512xf32>
    %67 = arith.mulf %65, %66 : vector<8x512xf32>
    %68 = arith.addf %63, %67 : vector<8x512xf32>
    %c1_41 = arith.constant 1 : index
    %c0_42 = arith.constant 0 : index
    %c0_43 = arith.constant 0 : index
    %69 = vector.load %arg6[%c1_41, %c0_42, %c0_43] : memref<9x8x512xf32, #tpu.memory_space<vmem>>, vector<1x8x512xf32>
    %70 = vector.shape_cast %69 : vector<1x8x512xf32> to vector<8x512xf32>
    %c16_i32_44 = arith.constant 16 : i32
    %71 = tpu.dynamic_rotate %60 by %c16_i32_44 dim 1 : vector<8x512xf32>, i32 -> vector<8x512xf32>
    %72 = arith.mulf %70, %71 : vector<8x512xf32>
    %73 = arith.addf %68, %72 : vector<8x512xf32>
    %c2_45 = arith.constant 2 : index
    %c0_46 = arith.constant 0 : index
    %c0_47 = arith.constant 0 : index
    %74 = vector.load %arg6[%c2_45, %c0_46, %c0_47] : memref<9x8x512xf32, #tpu.memory_space<vmem>>, vector<1x8x512xf32>
    %75 = vector.shape_cast %74 : vector<1x8x512xf32> to vector<8x512xf32>
    %c15_i32_48 = arith.constant 15 : i32
    %76 = tpu.dynamic_rotate %60 by %c15_i32_48 dim 1 : vector<8x512xf32>, i32 -> vector<8x512xf32>
    %77 = arith.mulf %75, %76 : vector<8x512xf32>
    %78 = arith.addf %73, %77 : vector<8x512xf32>
    %c3_49 = arith.constant 3 : index
    %c0_50 = arith.constant 0 : index
    %c0_51 = arith.constant 0 : index
    %79 = vector.load %arg6[%c3_49, %c0_50, %c0_51] : memref<9x8x512xf32, #tpu.memory_space<vmem>>, vector<1x8x512xf32>
    %80 = vector.shape_cast %79 : vector<1x8x512xf32> to vector<8x512xf32>
    %c1_i32_52 = arith.constant 1 : i32
    %81 = tpu.dynamic_rotate %60 by %c1_i32_52 dim 1 : vector<8x512xf32>, i32 -> vector<8x512xf32>
    %82 = arith.mulf %80, %81 : vector<8x512xf32>
    %83 = arith.addf %78, %82 : vector<8x512xf32>
    %c5_53 = arith.constant 5 : index
    %c0_54 = arith.constant 0 : index
    %c0_55 = arith.constant 0 : index
    %84 = vector.load %arg6[%c5_53, %c0_54, %c0_55] : memref<9x8x512xf32, #tpu.memory_space<vmem>>, vector<1x8x512xf32>
    %85 = vector.shape_cast %84 : vector<1x8x512xf32> to vector<8x512xf32>
    %c511_i32_56 = arith.constant 511 : i32
    %86 = tpu.dynamic_rotate %60 by %c511_i32_56 dim 1 : vector<8x512xf32>, i32 -> vector<8x512xf32>
    %87 = arith.mulf %85, %86 : vector<8x512xf32>
    %88 = arith.addf %83, %87 : vector<8x512xf32>
    %c6_57 = arith.constant 6 : index
    %c0_58 = arith.constant 0 : index
    %c0_59 = arith.constant 0 : index
    %89 = vector.load %arg6[%c6_57, %c0_58, %c0_59] : memref<9x8x512xf32, #tpu.memory_space<vmem>>, vector<1x8x512xf32>
    %90 = vector.shape_cast %89 : vector<1x8x512xf32> to vector<8x512xf32>
    %c497_i32_60 = arith.constant 497 : i32
    %91 = tpu.dynamic_rotate %60 by %c497_i32_60 dim 1 : vector<8x512xf32>, i32 -> vector<8x512xf32>
    %92 = arith.mulf %90, %91 : vector<8x512xf32>
    %93 = arith.addf %88, %92 : vector<8x512xf32>
    %c7_61 = arith.constant 7 : index
    %c0_62 = arith.constant 0 : index
    %c0_63 = arith.constant 0 : index
    %94 = vector.load %arg6[%c7_61, %c0_62, %c0_63] : memref<9x8x512xf32, #tpu.memory_space<vmem>>, vector<1x8x512xf32>
    %95 = vector.shape_cast %94 : vector<1x8x512xf32> to vector<8x512xf32>
    %c496_i32_64 = arith.constant 496 : i32
    %96 = tpu.dynamic_rotate %60 by %c496_i32_64 dim 1 : vector<8x512xf32>, i32 -> vector<8x512xf32>
    %97 = arith.mulf %95, %96 : vector<8x512xf32>
    %98 = arith.addf %93, %97 : vector<8x512xf32>
    %c8_65 = arith.constant 8 : index
    %c0_66 = arith.constant 0 : index
    %c0_67 = arith.constant 0 : index
    %99 = vector.load %arg6[%c8_65, %c0_66, %c0_67] : memref<9x8x512xf32, #tpu.memory_space<vmem>>, vector<1x8x512xf32>
    %100 = vector.shape_cast %99 : vector<1x8x512xf32> to vector<8x512xf32>
    %c495_i32_68 = arith.constant 495 : i32
    %101 = tpu.dynamic_rotate %60 by %c495_i32_68 dim 1 : vector<8x512xf32>, i32 -> vector<8x512xf32>
    %102 = arith.mulf %100, %101 : vector<8x512xf32>
    %103 = arith.addf %98, %102 : vector<8x512xf32>
    %c0_69 = arith.constant 0 : index
    %c0_70 = arith.constant 0 : index
    %c0_71 = arith.constant 0 : index
    %104 = vector.load %arg7[%c0_69, %c0_70, %c0_71] : memref<2x8x1xf32, #tpu.memory_space<vmem>>, vector<1x8x1xf32>
    %105 = vector.shape_cast %104 : vector<1x8x1xf32> to vector<8x1xf32>
    %106 = vector.broadcast %105 : vector<8x1xf32> to vector<8x512xf32>
    %107 = arith.mulf %103, %106 : vector<8x512xf32>
    %c1_72 = arith.constant 1 : index
    %c0_73 = arith.constant 0 : index
    %c0_74 = arith.constant 0 : index
    %108 = vector.load %arg7[%c1_72, %c0_73, %c0_74] : memref<2x8x1xf32, #tpu.memory_space<vmem>>, vector<1x8x1xf32>
    %109 = vector.shape_cast %108 : vector<1x8x1xf32> to vector<8x1xf32>
    %110 = vector.broadcast %109 : vector<8x1xf32> to vector<8x512xf32>
    %111 = arith.addf %107, %110 : vector<8x512xf32>
    %112 = arith.addf %111, %1 : vector<8x512xf32>
    %c0_75 = arith.constant 0 : index
    %c0_76 = arith.constant 0 : index
    %c0_77 = arith.constant 0 : index
    %113 = vector.load %arg8[%c0_75, %c0_76, %c0_77] : memref<1x8x512xf32, #tpu.memory_space<vmem>>, vector<1x8x512xf32>
    %114 = vector.shape_cast %113 : vector<1x8x512xf32> to vector<8x512xf32>
    %115 = vector.shape_cast %112 : vector<8x512xf32> to vector<1x8x512xf32>
    tpu.vector_store %arg8[%c0_75, %c0_76, %c0_77], %115 {strides = array<i32>} : memref<1x8x512xf32, #tpu.memory_space<vmem>>, vector<1x8x512xf32>,
    return
  }
  func.func @transform_0(%arg0: i32) -> (i32, i32, i32) {
    %c0_i32 = arith.constant 0 : i32
    %c0_i32_0 = arith.constant 0 : i32
    %c0_i32_1 = arith.constant 0 : i32
    return %arg0, %c0_i32, %c0_i32_0 : i32, i32, i32
  }
  func.func @transform_1(%arg0: i32) -> (i32, i32) {
    %c0_i32 = arith.constant 0 : i32
    %c0_i32_0 = arith.constant 0 : i32
    %c0_i32_1 = arith.constant 0 : i32
    return %c0_i32, %c0_i32_0 : i32, i32
  }
  func.func @transform_2(%arg0: i32) -> (i32, i32, i32) {
    %c0_i32 = arith.constant 0 : i32
    %c0_i32_0 = arith.constant 0 : i32
    %c0_i32_1 = arith.constant 0 : i32
    %c0_i32_2 = arith.constant 0 : i32
    return %c0_i32, %c0_i32_0, %c0_i32_1 : i32, i32, i32
  }
  func.func @transform_3(%arg0: i32) -> (i32, i32, i32) {
    %c0_i32 = arith.constant 0 : i32
    %c0_i32_0 = arith.constant 0 : i32
    %c0_i32_1 = arith.constant 0 : i32
    %c0_i32_2 = arith.constant 0 : i32
    return %c0_i32, %c0_i32_0, %c0_i32_1 : i32, i32, i32
  }
  func.func @transform_4(%arg0: i32) -> (i32, i32) {
    %c0_i32 = arith.constant 0 : i32
    %c0_i32_0 = arith.constant 0 : i32
    %c0_i32_1 = arith.constant 0 : i32
    return %c0_i32, %c0_i32_0 : i32, i32
  }
  func.func @transform_5(%arg0: i32) -> (i32, i32, i32) {
    %c0_i32 = arith.constant 0 : i32
    %c0_i32_0 = arith.constant 0 : i32
    %c0_i32_1 = arith.constant 0 : i32
    %c0_i32_2 = arith.constant 0 : i32
    return %c0_i32, %c0_i32_0, %c0_i32_1 : i32, i32, i32
  }
  func.func @transform_6(%arg0: i32) -> (i32, i32, i32) {
    %c0_i32 = arith.constant 0 : i32
    %c0_i32_0 = arith.constant 0 : i32
    %c0_i32_1 = arith.constant 0 : i32
    %c0_i32_2 = arith.constant 0 : i32
    return %c0_i32, %c0_i32_0, %c0_i32_1 : i32, i32, i32
  }
  func.func @transform_7(%arg0: i32) -> (i32, i32, i32) {
    %c0_i32 = arith.constant 0 : i32
    %c0_i32_0 = arith.constant 0 : i32
    %c0_i32_1 = arith.constant 0 : i32
    return %arg0, %c0_i32, %c0_i32_0 : i32, i32, i32
  }
}

</mosaic_0001>

<bundles_post_ra>
// kernel: ghost_block_fwd.1
= control target key start
LH: loop header
LB: loop body
LE: loop exit
PB: predicated region body
PF: predicated region fallthrough
CT: control target
= control target key end

     0   :  { %12 = vsyncpa [#allocation3], 0  ;;  %s1041_s27 = smov [#allocation2]   ;;  %s1042_s29 = smov 512   ;;  %s1897_s0 = inlined_call_operand.vmem [shape: f32[1,8,512], index: 0, kind: input, shape index: {}]   ;;  %s1898_s1 = inlined_call_operand.vmem [shape: f32[16,8], index: 1, kind: input, shape index: {}]   ;;  %s1899_s2 = inlined_call_operand.hbm [shape: f32[9,16,512], index: 2, kind: input, shape index: {}]   ;;  %s1900_s3 = inlined_call_operand.vmem [shape: f32[2,16,1], index: 3, kind: input, shape index: {}]   ;;  %s1901_s4 = inlined_call_operand.vmem [shape: f32[8,16], index: 4, kind: input, shape index: {}]   ;;  %s1902_s5 = inlined_call_operand.vmem [shape: f32[9,8,512], index: 5, kind: input, shape index: {}]   ;;  %s1903_s6 = inlined_call_operand.vmem [shape: f32[2,8,1], index: 6, kind: input, shape index: {}]   ;;  %s1904_s7 = inlined_call_operand.vmem [shape: f32[1,8,512], index: 7, kind: output, shape index: {}]  }
   0x1   :  { %s21_s26 = sshll.u32 %s1899_s2, 4  ;;  %s23_s28 = sshll.u32 %s1041_s27, 4  ;;  %s22_s26 = int_to_ptr.hbm [resolvable:$true] %s21_s26  ;;  %s24_s28 = int_to_ptr.vmem [resolvable:$true] %s23_s28 }
   0x2   :  { %s1043_s30 = smov 32  }
   0x3   :  { %29 = dma.hbm_to_vmem [thread:$0]  %s22_s26, 9216, %s24_s28, [#allocation3], %s1042_s29, %s1042_s29, %s1043_s30  }
   0x4   :  { %1039 = dma.done.wait [#allocation3], 9216  }
   0x5   :  { %1040 = vsyncadd [#allocation3], 4294958080  ;;  %vm48_vm0 = vcmask 64512   ;;  %v42_v0 = vld [vmem:[%s1897_s0] sm:$0xff]  ;;  %v43_v1 = vld [vmem:[%s1897_s0 + $0x8] sm:$0xff]  ;;  %s1044_s19 = smov 17   ;;  %v188_v16 = vlaneseq }
   0x6   :  { %v46_v2 = vld [vmem:[%s1898_s1] sm:$0xff]  ;;  %70 = vmatpush.msra.mxu0 %v42_v0  ;;  %93 = vmatpush.msra.mxu1 %v43_v1  ;;  %v44_v3 = vld [vmem:[%s1897_s0 + $0x10] sm:$0xff]  ;;  %v45_v4 = vld [vmem:[%s1897_s0 + $0x18] sm:$0xff]  ;;  %s1045_s20 = smov 16   ;;  %s1047_s21 = smov 15   ;;  %v1052_v38 = vmov 0  }
   0x7   :  { %949 = vmatmul.msk.f32.vlgmr.msra.gmra.mxu0 %vm48_vm0, %v46_v2  ;;  %951 = vmatmul.msk.f32.vlgmr.msra.gmra.mxu1 %vm48_vm0, %v46_v2  ;;  %v47_v5 = vld [vmem:[%s1898_s1 + $0x8] sm:$0xff]  ;;  %s1046_s1 = smov 111   ;;  %s1048_s22 = smov 1   ;;  %v1226_v18 = vand.u32 127, %v188_v16  ;;  %vm623_vm9 = vcmask 130048  }
   0x8   :  { %116 = vmatpush.msra.mxu2 %v44_v3  ;;  %139 = vmatpush.msra.mxu3 %v45_v4  ;;  %s1049_s23 = smov 113   ;;  %s1050_s24 = smov 127   ;;  %v165_v25 = vld [vmem:[#allocation2 + $0x8] sm:$0xff] }
   0x9   :  { %953 = vmatmul.msk.f32.vlgmr.msra.gmra.mxu2 %vm48_vm0, %v46_v2  ;;  %955 = vmatmul.msk.f32.vlgmr.msra.gmra.mxu3 %vm48_vm0, %v46_v2  ;;  %s1051_s25 = smov 112   ;;  %vm190_vm1 = vcmp.lt.s32.totalorder %v1226_v18, 17  ;;  %vm240_vm2 = vcmp.lt.s32.totalorder %v1226_v18, 16  ;;  %v149_v26 = vld [vmem:[#allocation2 + $0x108] sm:$0xff]  ;;  %vm290_vm3 = vcmp.lt.s32.totalorder %v1226_v18, 15  ;;  %vm340_vm4 = vcmp.lt.s32.totalorder %v1226_v18, 1 }
   0xa   :  { %v217_v28 = vld [vmem:[#allocation2 + $0x48] sm:$0xff]  ;;  %1008 = vset.pattern.permute.xlu1 %v1052_v38  ;;  %1009 = vset.pattern.permute.xlu2 %v1052_v38  ;;  %vm390_vm5 = vcmp.lt.s32.totalorder %v1226_v18, 127  ;;  %vm490_vm6 = vcmp.lt.s32.totalorder %v1226_v18, 112  ;;  %vm440_vm7 = vcmp.lt.s32.totalorder %v1226_v18, 113  ;;  %vm540_vm8 = vcmp.lt.s32.totalorder %v1226_v18, 111 }
   0xb   :  { %1010 = vset.pattern.permute.xlu0 %v1052_v38  ;;  %v267_v39 = vld [vmem:[#allocation2 + $0x88] sm:$0xff]  ;;  %v266_v38 = vld [vmem:[#allocation2 + $0x80] sm:$0xff] }
   0xc   :  { %v317_v51 = vld [vmem:[#allocation2 + $0xc8] sm:$0xff] }
   0xd   :  { %v566_v2 = vld [vmem:[%s1900_s3 + $0x8] sm:$0xff] }
   0xe   :  { %v367_v3 = vld [vmem:[#allocation2 + $0x148] sm:$0xff] }
   0xf   :  { %952 = vmatmul.msk.f32.gmra.mxu1 %vm48_vm0, %v47_v5  ;;  %950 = vmatmul.msk.f32.gmra.mxu0 %vm48_vm0, %v47_v5 }
  0x11   :  { %956 = vmatmul.msk.f32.gmra.mxu3 %vm48_vm0, %v47_v5  ;;  %954 = vmatmul.msk.f32.gmra.mxu2 %vm48_vm0, %v47_v5 }
  0x84   :  { %v1122_v6 = vpop.f32.mrf.mxu0  ;;  %v1124_v7 = vpop.f32.mrf.mxu1 }
  0x85   :  { %176 = vrot.lane.b32.xlu1 %v1124_v7, %s1044_s19  ;;  %224 = vrot.lane.b32.xlu2 %v1122_v6, %s1045_s20  ;;  %v157_v29 = vmul.f32 %v149_v26, %v1124_v7 }
  0x86   :  { %172 = vrot.lane.b32.xlu0 %v1122_v6, %s1044_s19 }
  0x8c   :  { %v1138_v8 = vpop.f32.mrf.mxu2  ;;  %v1146_v9 = vpop.f32.mrf.mxu3 }
  0x8d   :  { %228 = vrot.lane.b32.xlu1 %v1124_v7, %s1045_s20  ;;  %524 = vrot.lane.b32.xlu2 %v1122_v6, %s1046_s1  ;;  %v1178_v10 = vpop.f32.mrf.mxu1  ;;  %v1186_v11 = vpop.f32.mrf.mxu0 }
  0x8e   :  { %278 = vrot.lane.b32.xlu0 %v1124_v7, %s1047_s21 }
  0x94   :  { %v1206_v13 = vpop.f32.mrf.mxu3  ;;  %v1216_v15 = vpop.f32.mrf.mxu2 }
  0x95   :  { %274 = vrot.lane.b32.xlu1 %v1122_v6, %s1047_s21  ;;  %180 = vrot.lane.b32.xlu2 %v1138_v8, %s1044_s19 }
  0x96   :  { %328 = vrot.lane.b32.xlu0 %v1124_v7, %s1048_s22 }
  0x9d   :  { %424 = vrot.lane.b32.xlu1 %v1122_v6, %s1049_s23  ;;  %236 = vrot.lane.b32.xlu2 %v1146_v9, %s1045_s20 }
  0x9e   :  { %374 = vrot.lane.b32.xlu0 %v1122_v6, %s1050_s24 }
  0xa5   :  { %324 = vrot.lane.b32.xlu1 %v1122_v6, %s1048_s22  ;;  %282 = vrot.lane.b32.xlu2 %v1138_v8, %s1047_s21 }
  0xa6   :  { %474 = vrot.lane.b32.xlu0 %v1122_v6, %s1051_s25 }
  0xad   :  { %332 = vrot.lane.b32.xlu1 %v1138_v8, %s1048_s22  ;;  %286 = vrot.lane.b32.xlu2 %v1146_v9, %s1047_s21 }
  0xae   :  { %378 = vrot.lane.b32.xlu0 %v1124_v7, %s1050_s24 }
  0xb5   :  { %382 = vrot.lane.b32.xlu1 %v1138_v8, %s1050_s24  ;;  %336 = vrot.lane.b32.xlu2 %v1146_v9, %s1048_s22 }
  0xb6   :  { %184 = vrot.lane.b32.xlu0 %v1146_v9, %s1044_s19 }
  0xbd   :  { %482 = vrot.lane.b32.xlu1 %v1138_v8, %s1051_s25  ;;  %386 = vrot.lane.b32.xlu2 %v1146_v9, %s1050_s24 }
  0xbe   :  { %232 = vrot.lane.b32.xlu0 %v1138_v8, %s1045_s20 }
  0xc5   :  { %178 = vrot.lane.b32.xlu1 %v1178_v10, %s1044_s19  ;;  %432 = vrot.lane.b32.xlu2 %v1138_v8, %s1049_s23 }
  0xc6   :  { %436 = vrot.lane.b32.xlu0 %v1146_v9, %s1049_s23 }
  0xcd   :  { %280 = vrot.lane.b32.xlu1 %v1178_v10, %s1047_s21  ;;  %486 = vrot.lane.b32.xlu2 %v1146_v9, %s1051_s25 }
  0xce   :  { %174 = vrot.lane.b32.xlu0 %v1186_v11, %s1044_s19 }
  0xd5   :  { %230 = vrot.lane.b32.xlu2 %v1178_v10, %s1045_s20  ;;  %476 = vrot.lane.b32.xlu1 %v1186_v11, %s1051_s25 }
  0xd6   :  { %226 = vrot.lane.b32.xlu0 %v1186_v11, %s1045_s20 }
  0xdd   :  { %430 = vrot.lane.b32.xlu1 %v1178_v10, %s1049_s23  ;;  %276 = vrot.lane.b32.xlu2 %v1186_v11, %s1047_s21 }
  0xde   :  { %330 = vrot.lane.b32.xlu0 %v1178_v10, %s1048_s22 }
  0xdf   :  { %v225_v12 = vpop.permute.xlu2 %224 }
  0xe5   :  { %186 = vrot.lane.b32.xlu1 %v1206_v13, %s1044_s19  ;;  %380 = vrot.lane.b32.xlu2 %v1178_v10, %s1050_s24 }
  0xe6   :  { %376 = vrot.lane.b32.xlu0 %v1186_v11, %s1050_s24 }
  0xe7   :  { %v1214_v14 = vpop.permute.xlu2 %524 }
  0xed   :  { %234 = vrot.lane.b32.xlu1 %v1216_v15, %s1045_s20  ;;  %182 = vrot.lane.b32.xlu2 %v1216_v15, %s1044_s19 }
  0xee   :  { %426 = vrot.lane.b32.xlu0 %v1186_v11, %s1049_s23 }
  0xef   :  { %v1224_v17 = vpop.permute.xlu2 %180 }
  0xf5   :  { %288 = vrot.lane.b32.xlu1 %v1206_v13, %s1047_s21  ;;  %338 = vrot.lane.b32.xlu2 %v1206_v13, %s1048_s22 }
  0xf6   :  { %326 = vrot.lane.b32.xlu0 %v1186_v11, %s1048_s22 }
  0xf7   :  { %v177_v19 = vpop.permute.xlu1 %176  ;;  %v1236_v20 = vpop.permute.xlu2 %236 }
  0xf8   :  { %v1241_v21 = vsel %vm190_vm1, %v177_v19, %v1224_v17  ;;  %v1246_v22 = vsel %vm240_vm2, %v1236_v20, %v225_v12  ;;  %v1248_v23 = vpop.permute.xlu0 %172 }
  0xf9   :  { %v195_v24 = vsel %vm190_vm1, %v1248_v23, %v177_v19  ;;  %v148_v19 = vld [vmem:[#allocation2 + $0x100] sm:$0xff] }
  0xfa   :  { %v200_v27 = vmul.f32 %v195_v24, %v165_v25  ;;  %v164_v24 = vld [vmem:[#allocation2] sm:$0xff] }
  0xfc   :  { %v208_v34 = vadd.f32 %v200_v27, %v157_v29 }
  0xfd   :  { %334 = vrot.lane.b32.xlu1 %v1216_v15, %s1048_s22  ;;  %388 = vrot.lane.b32.xlu2 %v1206_v13, %s1050_s24 }
  0xfe   :  { %526 = vrot.lane.b32.xlu0 %v1186_v11, %s1046_s1 }
  0xff   :  { %v1261_v30 = vpop.permute.xlu1 %228  ;;  %v283_v31 = vpop.permute.xlu2 %282 }
 0x100   :  { %v245_v32 = vsel %vm240_vm2, %v225_v12, %v1261_v30  ;;  %v279_v33 = vpop.permute.xlu0 %278 }
 0x101   :  { %v250_v35 = vmul.f32 %v245_v32, %v217_v28  ;;  %v1268_v36 = vsel %vm290_vm3, %v279_v33, %v283_v31  ;;  %v216_v28 = vld [vmem:[#allocation2 + $0x40] sm:$0xff]  ;;  %v958_v32 = vld [vmem:[%s1900_s3 + $0x18] sm:$0xff] }
 0x103   :  { %v258_v37 = vadd.f32 %v250_v35, %v208_v34  ;;  %v167_v35 = vld [vmem:[#allocation2 + $0x18] sm:$0xff] }
 0x105   :  { %384 = vrot.lane.b32.xlu1 %v1216_v15, %s1050_s24  ;;  %438 = vrot.lane.b32.xlu2 %v1206_v13, %s1049_s23 }
 0x106   :  { %238 = vrot.lane.b32.xlu0 %v1206_v13, %s1045_s20 }
 0x107   :  { %v275_v40 = vpop.permute.xlu1 %274  ;;  %v287_v41 = vpop.permute.xlu2 %286 }
 0x108   :  { %v295_v42 = vsel %vm290_vm3, %v275_v40, %v279_v33  ;;  %v1280_v43 = vsel %vm290_vm3, %v283_v31, %v287_v41  ;;  %v1284_v44 = vsel %vm290_vm3, %v287_v41, %v275_v40  ;;  %v329_v45 = vpop.permute.xlu0 %328  ;;  %v565_v31 = vld [vmem:[%s1900_s3] sm:$0xff]  ;;  %v166_v33 = vld [vmem:[#allocation2 + $0x10] sm:$0xff]  ;;  %v249_v40 = vmul.f32 %v1246_v22, %v216_v28  ;;  %v219_v22 = vld [vmem:[#allocation2 + $0x58] sm:$0xff] }
 0x109   :  { %v300_v46 = vmul.f32 %v295_v42, %v267_v39  ;;  %v150_v39 = vld [vmem:[#allocation2 + $0x110] sm:$0xff]  ;;  %v201_v42 = vmul.f32 %v1241_v21, %v166_v33 }
 0x10b   :  { %v308_v47 = vadd.f32 %v300_v46, %v258_v37  ;;  %v156_v37 = vmul.f32 %v148_v19, %v1122_v6  ;;  %v318_v19 = vld [vmem:[#allocation2 + $0xd0] sm:$0xff] }
 0x10d   :  { %434 = vrot.lane.b32.xlu1 %v1216_v15, %s1049_s23  ;;  %484 = vrot.lane.b32.xlu2 %v1216_v15, %s1051_s25 }
 0x10e   :  { %284 = vrot.lane.b32.xlu0 %v1216_v15, %s1047_s21 }
 0x10f   :  { %v1292_v48 = vpop.permute.xlu1 %424  ;;  %v337_v49 = vpop.permute.xlu2 %336 }
 0x110   :  { %v375_v50 = vpop.permute.xlu0 %374 }
 0x115   :  { %534 = vrot.lane.b32.xlu1 %v1216_v15, %s1046_s1  ;;  %538 = vrot.lane.b32.xlu2 %v1206_v13, %s1046_s1 }
 0x116   :  { %488 = vrot.lane.b32.xlu0 %v1206_v13, %s1051_s25 }
 0x117   :  { %v325_v52 = vpop.permute.xlu1 %324  ;;  %v387_v53 = vpop.permute.xlu2 %386 }
 0x118   :  { %v345_v54 = vsel %vm340_vm4, %v325_v52, %v329_v45  ;;  %v347_v55 = vsel %vm340_vm4, %v337_v49, %v325_v52  ;;  %v1308_v56 = vsel %vm390_vm5, %v387_v53, %v375_v50  ;;  %v1310_v57 = vpop.permute.xlu0 %474  ;;  %v158_v52 = vmul.f32 %v150_v39, %v1138_v8 }
 0x119   :  { %v350_v58 = vmul.f32 %v345_v54, %v317_v51  ;;  %v218_v51 = vld [vmem:[#allocation2 + $0x50] sm:$0xff] }
 0x11b   :  { %v358_v59 = vadd.f32 %v350_v58, %v308_v47  ;;  %v299_v47 = vmul.f32 %v1284_v44, %v266_v38  ;;  %v268_v58 = vld [vmem:[#allocation2 + $0x90] sm:$0xff] }
 0x11d   :  { %536 = vrot.lane.b32.xlu1 %v1146_v9, %s1046_s1  ;;  %428 = vrot.lane.b32.xlu2 %v1124_v7, %s1049_s23 }
 0x11e   :  { %532 = vrot.lane.b32.xlu0 %v1138_v8, %s1046_s1 }
 0x11f   :  { %v333_v60 = vpop.permute.xlu1 %332  ;;  %v1318_v61 = vpop.permute.xlu2 %432 }
 0x120   :  { %v1322_v62 = vsel %vm340_vm4, %v333_v60, %v337_v49  ;;  %v1326_v63 = vsel %vm340_vm4, %v329_v45, %v333_v60  ;;  %v379_v0 = vpop.permute.xlu0 %378  ;;  %v316_v45 = vld [vmem:[#allocation2 + $0xc0] sm:$0xff] }
 0x121   :  { %v395_v1 = vsel %vm390_vm5, %v375_v50, %v379_v0  ;;  %v349_v60 = vmul.f32 %v347_v55, %v316_v45 }
 0x125   :  { %574 = vperm.xlu1 %1008, %v566_v2   ;;  %478 = vrot.lane.b32.xlu2 %v1124_v7, %s1051_s25 }
 0x126   :  { %480 = vrot.lane.b32.xlu0 %v1178_v10, %s1051_s25 }
 0x127   :  { %v383_v4 = vpop.permute.xlu1 %382  ;;  %v1337_v5 = vpop.permute.xlu2 %486 }
 0x128   :  { %v1341_v12 = vsel %vm390_vm5, %v383_v4, %v387_v53  ;;  %v393_v16 = vsel %vm390_vm5, %v379_v0, %v383_v4  ;;  %v185_v25 = vpop.permute.xlu0 %184  ;;  %v366_v53 = vld [vmem:[#allocation2 + $0x140] sm:$0xff] }
 0x129   :  { %v400_v26 = vmul.f32 %v393_v16, %v367_v3  ;;  %v191_v27 = vsel %vm190_vm1, %v1224_v17, %v185_v25  ;;  %v197_v29 = vsel %vm190_vm1, %v185_v25, %v1248_v23  ;;  %v151_v23 = vld [vmem:[#allocation2 + $0x118] sm:$0xff]  ;;  %v209_v3 = vadd.f32 %v201_v42, %v158_v52  ;;  %v468_v42 = vld [vmem:[#allocation2 + $0x1d0] sm:$0xff] }
 0x12a   :  { %v199_v17 = vmul.f32 %v197_v29, %v164_v24  ;;  %v202_v46 = vmul.f32 %v191_v27, %v167_v35  ;;  %v159_v54 = vmul.f32 %v151_v23, %v1146_v9  ;;  %v957_v9 = vld [vmem:[%s1900_s3 + $0x10] sm:$0xff]  ;;  %v319_v24 = vld [vmem:[#allocation2 + $0xd8] sm:$0xff]  ;;  %v399_v55 = vmul.f32 %v395_v1, %v366_v53 }
 0x12b   :  { %v1357_v34 = vadd.f32 %v400_v26, %v358_v59  ;;  %v269_v59 = vld [vmem:[#allocation2 + $0x98] sm:$0xff]  ;;  %v301_v26 = vmul.f32 %v1268_v36, %v268_v58  ;;  %v352_v1 = vmul.f32 %v1322_v62, %v319_v24  ;;  %v497_v62 = vsel %vm490_vm6, %v1337_v5, %v1310_v57 }
 0x12c   :  { %v207_v41 = vadd.f32 %v199_v17, %v156_v37  ;;  %v210_v4 = vadd.f32 %v202_v46, %v159_v54  ;;  %v369_v29 = vld [vmem:[#allocation2 + $0x158] sm:$0xff] }
 0x12d   :  { %569 = vperm.xlu1 %1008, %v565_v31   ;;  %595 = vperm.xlu2 %1009, %v958_v32   ;;  %v351_v32 = vmul.f32 %v1326_v63, %v318_v19  ;;  %v419_v37 = vld [vmem:[#allocation2 + $0x198] sm:$0xff]  ;;  %v402_v38 = vmul.f32 %v1308_v56, %v369_v29 }
 0x12e   :  { %530 = vrot.lane.b32.xlu0 %v1178_v10, %s1046_s1  ;;  %v257_v49 = vadd.f32 %v249_v40, %v207_v41  ;;  %v469_v63 = vld [vmem:[#allocation2 + $0x1d8] sm:$0xff] }
 0x12f   :  { %v1365_v6 = vpop.permute.xlu1 %482  ;;  %v1367_v50 = vpop.permute.xlu2 %230 }
 0x130   :  { %v233_v21 = vpop.permute.xlu0 %232  ;;  %v307_v0 = vadd.f32 %v299_v47, %v257_v49 }
 0x131   :  { %v241_v44 = vsel %vm240_vm2, %v233_v21, %v1236_v20  ;;  %v243_v2 = vsel %vm240_vm2, %v1261_v30, %v233_v21  ;;  %v302_v20 = vmul.f32 %v1280_v43, %v269_v59  ;;  %v368_v30 = vld [vmem:[#allocation2 + $0x150] sm:$0xff] }
 0x132   :  { %v251_v16 = vmul.f32 %v243_v2, %v218_v51  ;;  %v252_v8 = vmul.f32 %v241_v44, %v219_v22  ;;  %v357_v25 = vadd.f32 %v349_v60, %v307_v0  ;;  %v418_v43 = vld [vmem:[#allocation2 + $0x190] sm:$0xff]  ;;  %v401_v39 = vmul.f32 %v1341_v12, %v368_v30  ;;  %v169_v0 = vld [vmem:[#allocation2 + $0x28] sm:$0xff] }
 0x133   :  { %v502_v51 = vmul.f32 %v497_v62, %v469_v63  ;;  %v153_v44 = vld [vmem:[#allocation2 + $0x128] sm:$0xff] }
 0x134   :  { %v259_v27 = vadd.f32 %v251_v16, %v209_v3  ;;  %v260_v28 = vadd.f32 %v252_v8, %v210_v4  ;;  %v1384_v31 = vadd.f32 %v399_v55, %v357_v25  ;;  %v221_v4 = vld [vmem:[#allocation2 + $0x68] sm:$0xff]  ;;  %v161_v16 = vmul.f32 %v153_v44, %v1178_v10 }
 0x135   :  { %590 = vperm.xlu1 %1008, %v957_v9   ;;  %v271_v9 = vld [vmem:[#allocation2 + $0xa8] sm:$0xff] }
 0x136   :  { %v309_v33 = vadd.f32 %v301_v26, %v259_v27  ;;  %v310_v35 = vadd.f32 %v302_v20, %v260_v28  ;;  %528 = vrot.lane.b32.xlu0 %v1124_v7, %s1046_s1  ;;  %v491_v7 = vsel %vm490_vm6, %v1365_v6, %v1337_v5 }
 0x137   :  { %v179_v36 = vpop.permute.xlu1 %178  ;;  %v1390_v17 = vpop.permute.xlu2 %276  ;;  %v501_v22 = vmul.f32 %v491_v7, %v468_v42 }
 0x138   :  { %v359_v40 = vadd.f32 %v351_v32, %v309_v33  ;;  %v360_v23 = vadd.f32 %v352_v1, %v310_v35  ;;  %v437_v41 = vpop.permute.xlu0 %436  ;;  %v170_v35 = vld [vmem:[#allocation2 + $0x30] sm:$0xff] }
 0x139   :  { %v441_v56 = vsel %vm440_vm7, %v1318_v61, %v437_v41  ;;  %v447_v12 = vsel %vm440_vm7, %v437_v41, %v1292_v48 }
 0x13a   :  { %v409_v45 = vadd.f32 %v401_v39, %v359_v40  ;;  %v410_v46 = vadd.f32 %v402_v38, %v360_v23  ;;  %v451_v47 = vmul.f32 %v441_v56, %v418_v43  ;;  %v452_v49 = vmul.f32 %v447_v12, %v419_v37  ;;  %v154_v37 = vld [vmem:[#allocation2 + $0x130] sm:$0xff] }
 0x13b   :  { %v222_v40 = vld [vmem:[#allocation2 + $0x70] sm:$0xff]  ;;  %v162_v23 = vmul.f32 %v154_v37, %v1216_v15 }
 0x13c   :  { %v459_v52 = vadd.f32 %v451_v47, %v409_v45  ;;  %v460_v53 = vadd.f32 %v452_v49, %v410_v46  ;;  %v321_v45 = vld [vmem:[#allocation2 + $0xe8] sm:$0xff] }
 0x13e   :  { %v1408_v54 = vadd.f32 %v502_v51, %v460_v53  ;;  %v1410_v21 = vadd.f32 %v501_v22, %v459_v52  ;;  %v168_v52 = vld [vmem:[#allocation2 + $0x20] sm:$0xff] }
 0x13f   :  { %v1412_v5 = vpop.permute.xlu1 %280  ;;  %v381_v58 = vpop.permute.xlu2 %380 }
 0x140   :  { %v175_v59 = vpop.permute.xlu0 %174  ;;  %v296_v19 = vsel %vm290_vm3, %v1390_v17, %v1412_v5 }
 0x141   :  { %v196_v60 = vsel %vm190_vm1, %v175_v59, %v179_v36  ;;  %v304_v20 = vmul.f32 %v296_v19, %v271_v9  ;;  %v171_v19 = vld [vmem:[#allocation2 + $0x38] sm:$0xff] }
 0x142   :  { %v204_v2 = vmul.f32 %v196_v60, %v169_v0  ;;  %v152_v60 = vld [vmem:[#allocation2 + $0x120] sm:$0xff]  ;;  %v371_v0 = vld [vmem:[#allocation2 + $0x168] sm:$0xff] }
 0x144   :  { %v212_v25 = vadd.f32 %v204_v2, %v161_v16  ;;  %v220_v16 = vld [vmem:[#allocation2 + $0x60] sm:$0xff] }
 0x147   :  { %v1416_v3 = vpop.permute.xlu1 %476  ;;  %v183_v24 = vpop.permute.xlu2 %182 }
 0x148   :  { %v227_v8 = vpop.permute.xlu0 %226  ;;  %v194_v43 = vsel %vm190_vm1, %v179_v36, %v183_v24 }
 0x149   :  { %v246_v55 = vsel %vm240_vm2, %v227_v8, %v1367_v50  ;;  %v205_v38 = vmul.f32 %v194_v43, %v170_v35 }
 0x14a   :  { %v254_v26 = vmul.f32 %v246_v55, %v221_v4  ;;  %v160_v55 = vmul.f32 %v152_v60, %v1186_v11  ;;  %v320_v11 = vld [vmem:[#allocation2 + $0xe0] sm:$0xff] }
 0x14b   :  { %v213_v42 = vadd.f32 %v205_v38, %v162_v23 }
 0x14c   :  { %v262_v27 = vadd.f32 %v254_v26, %v212_v25 }
 0x14e   :  { %v312_v28 = vadd.f32 %v304_v20, %v262_v27  ;;  %v270_v20 = vld [vmem:[#allocation2 + $0xa0] sm:$0xff] }
 0x14f   :  { %v1426_v29 = vpop.permute.xlu1 %430  ;;  %v1430_v30 = vpop.permute.xlu2 %338 }
 0x150   :  { %v1428_v10 = vpop.permute.xlu0 %330 }
 0x157   :  { %v187_v32 = vpop.permute.xlu1 %186  ;;  %v1441_v39 = vpop.permute.xlu2 %388 }
 0x158   :  { %v1432_v1 = vpop.permute.xlu0 %376  ;;  %v198_v53 = vsel %vm190_vm1, %v187_v32, %v175_v59  ;;  %v192_v25 = vsel %vm190_vm1, %v183_v24, %v187_v32  ;;  %v223_v32 = vld [vmem:[#allocation2 + $0x78] sm:$0xff] }
 0x159   :  { %v1437_v33 = vsel %vm390_vm5, %v1432_v1, %v381_v58  ;;  %v203_v44 = vmul.f32 %v198_v53, %v168_v52  ;;  %v206_v38 = vmul.f32 %v192_v25, %v171_v19  ;;  %v273_v53 = vld [vmem:[#allocation2 + $0xb8] sm:$0xff] }
 0x15a   :  { %v323_v19 = vld [vmem:[#allocation2 + $0xf8] sm:$0xff] }
 0x15b   :  { %v211_v35 = vadd.f32 %v203_v44, %v160_v55 }
 0x15f   :  { %v235_v41 = vpop.permute.xlu1 %234  ;;  %v1451_v12 = vpop.permute.xlu2 %438 }
 0x160   :  { %v244_v63 = vsel %vm240_vm2, %v1367_v50, %v235_v41  ;;  %v1447_v62 = vpop.permute.xlu0 %426 }
 0x161   :  { %v255_v7 = vmul.f32 %v244_v63, %v222_v40  ;;  %v421_v63 = vld [vmem:[#allocation2 + $0x1a8] sm:$0xff] }
 0x163   :  { %v1449_v56 = vadd.f32 %v255_v7, %v213_v42  ;;  %v370_v42 = vld [vmem:[#allocation2 + $0x160] sm:$0xff] }
 0x167   :  { %v289_v36 = vpop.permute.xlu1 %288  ;;  %v1458_v50 = vpop.permute.xlu2 %484 }
 0x168   :  { %v327_v46 = vpop.permute.xlu0 %326  ;;  %v298_v59 = vsel %vm290_vm3, %v289_v36, %v1390_v17 }
 0x169   :  { %v346_v15 = vsel %vm340_vm4, %v327_v46, %v1428_v10  ;;  %v348_v24 = vsel %vm340_vm4, %v1430_v30, %v327_v46  ;;  %v303_v17 = vmul.f32 %v298_v59, %v270_v20  ;;  %v272_v46 = vld [vmem:[#allocation2 + $0xb0] sm:$0xff] }
 0x16a   :  { %v354_v47 = vmul.f32 %v346_v15, %v321_v45  ;;  %v353_v7 = vmul.f32 %v348_v24, %v320_v11 }
 0x16c   :  { %v362_v49 = vadd.f32 %v354_v47, %v312_v28  ;;  %v155_v28 = vld [vmem:[#allocation2 + $0x138] sm:$0xff] }
 0x16f   :  { %v335_v51 = vpop.permute.xlu1 %334 }
 0x170   :  { %v1456_v22 = vpop.permute.xlu0 %526  ;;  %v344_v44 = vsel %vm340_vm4, %v1428_v10, %v335_v51  ;;  %v342_v55 = vsel %vm340_vm4, %v335_v51, %v1430_v30  ;;  %v373_v51 = vld [vmem:[#allocation2 + $0x178] sm:$0xff] }
 0x177   :  { %v385_v2 = vpop.permute.xlu1 %384 }
 0x178   :  { %v394_v4 = vsel %vm390_vm5, %v381_v58, %v385_v2  ;;  %v239_v9 = vpop.permute.xlu0 %238  ;;  %v1472_v58 = vpop.permute.xlu2 %538 }
 0x179   :  { %v404_v26 = vmul.f32 %v394_v4, %v371_v0  ;;  %v248_v27 = vsel %vm240_vm2, %v239_v9, %v227_v8  ;;  %v242_v40 = vsel %vm240_vm2, %v235_v41, %v239_v9  ;;  %v163_v8 = vmul.f32 %v155_v28, %v1206_v13  ;;  %v420_v0 = vld [vmem:[#allocation2 + $0x1a0] sm:$0xff]  ;;  %v322_v41 = vld [vmem:[#allocation2 + $0xf0] sm:$0xff] }
 0x17a   :  { %v253_v37 = vmul.f32 %v248_v27, %v220_v16  ;;  %v256_v45 = vmul.f32 %v242_v40, %v223_v32  ;;  %v446_v13 = vsel %vm440_vm7, %v1447_v62, %v1426_v29  ;;  %v403_v9 = vmul.f32 %v1437_v33, %v370_v42 }
 0x17b   :  { %v412_v43 = vadd.f32 %v404_v26, %v362_v49  ;;  %v214_v49 = vadd.f32 %v206_v38, %v163_v8  ;;  %v398_v33 = vsel %vm390_vm5, %v1441_v39, %v1432_v1  ;;  %v453_v27 = vmul.f32 %v446_v13, %v420_v0  ;;  %v423_v8 = vld [vmem:[#allocation2 + $0x1b8] sm:$0xff] }
 0x17c   :  { %v261_v23 = vadd.f32 %v253_v37, %v211_v35  ;;  %v355_v28 = vmul.f32 %v344_v44, %v322_v41  ;;  %v356_v35 = vmul.f32 %v342_v55, %v323_v19  ;;  %v406_v40 = vmul.f32 %v398_v33, %v373_v51  ;;  %v523_v41 = vld [vmem:[#allocation2 + $0x238] sm:$0xff] }
 0x17d   :  { %v264_v26 = vadd.f32 %v256_v45, %v214_v49  ;;  %v473_v45 = vld [vmem:[#allocation2 + $0x1f8] sm:$0xff]  ;;  %v548_v44 = vsel %vm540_vm8, %v1472_v58, %v1456_v22 }
 0x17e   :  { %v311_v15 = vadd.f32 %v303_v17, %v261_v23  ;;  %v556_v55 = vmul.f32 %v548_v44, %v523_v41 }
 0x17f   :  { %v435_v47 = vpop.permute.xlu1 %434 }
 0x180   :  { %v444_v52 = vsel %vm440_vm7, %v1426_v29, %v435_v47  ;;  %v285_v60 = vpop.permute.xlu0 %284  ;;  %v361_v4 = vadd.f32 %v353_v7, %v311_v15  ;;  %v1508_v37 = vpop.permute.xlu2 %428  ;;  %v472_v7 = vld [vmem:[#allocation2 + $0x1f0] sm:$0xff] }
 0x181   :  { %v454_v16 = vmul.f32 %v444_v52, %v421_v63  ;;  %v292_v25 = vsel %vm290_vm3, %v285_v60, %v289_v36  ;;  %v294_v29 = vsel %vm290_vm3, %v1412_v5, %v285_v60  ;;  %v372_v36 = vld [vmem:[#allocation2 + $0x170] sm:$0xff]  ;;  %v392_v5 = vsel %vm390_vm5, %v385_v2, %v1441_v39 }
 0x182   :  { %v305_v10 = vmul.f32 %v294_v29, %v272_v46  ;;  %v306_v59 = vmul.f32 %v292_v25, %v273_v53  ;;  %v411_v30 = vadd.f32 %v403_v9, %v361_v4  ;;  %v405_v17 = vmul.f32 %v392_v5, %v372_v36  ;;  %v422_v2 = vld [vmem:[#allocation2 + $0x1b0] sm:$0xff]  ;;  %v471_v36 = vld [vmem:[#allocation2 + $0x1e8] sm:$0xff] }
 0x183   :  { %v1499_v20 = vadd.f32 %v454_v16, %v412_v43  ;;  %v448_v39 = vsel %vm440_vm7, %v1451_v12, %v1447_v62  ;;  %v522_v4 = vld [vmem:[#allocation2 + $0x230] sm:$0xff] }
 0x184   :  { %v313_v43 = vadd.f32 %v305_v10, %v1449_v56  ;;  %v314_v38 = vadd.f32 %v306_v59, %v264_v26  ;;  %v1511_v11 = vadd.f32 %v453_v27, %v411_v30  ;;  %v442_v56 = vsel %vm440_vm7, %v435_v47, %v1451_v12 }
 0x185   :  { %v456_v52 = vmul.f32 %v448_v39, %v423_v8  ;;  %v455_v46 = vmul.f32 %v442_v56, %v422_v2  ;;  %v520_v56 = vld [vmem:[#allocation2 + $0x220] sm:$0xff] }
 0x186   :  { %v363_v24 = vadd.f32 %v355_v28, %v313_v43  ;;  %v364_v32 = vadd.f32 %v356_v35, %v314_v38  ;;  %v470_v35 = vld [vmem:[#allocation2 + $0x1e0] sm:$0xff] }
 0x187   :  { %v1513_v1 = vpop.permute.xlu1 %534 }
 0x188   :  { %v489_v23 = vpop.permute.xlu0 %488  ;;  %v413_v63 = vadd.f32 %v405_v17, %v363_v24  ;;  %v414_v42 = vadd.f32 %v406_v40, %v364_v32  ;;  %v479_v47 = vpop.permute.xlu2 %478  ;;  %v542_v16 = vsel %vm540_vm8, %v1513_v1, %v1472_v58  ;;  %v519_v24 = vld [vmem:[#allocation2 + $0x218] sm:$0xff]  ;;  %v518_v40 = vld [vmem:[#allocation2 + $0x210] sm:$0xff] }
 0x189   :  { %v492_v15 = vsel %vm490_vm6, %v1458_v50, %v489_v23  ;;  %v498_v49 = vsel %vm490_vm6, %v489_v23, %v1416_v3  ;;  %v555_v25 = vmul.f32 %v542_v16, %v522_v4 }
 0x18a   :  { %v463_v62 = vadd.f32 %v455_v46, %v413_v63  ;;  %v464_v53 = vadd.f32 %v456_v52, %v414_v42  ;;  %v505_v60 = vmul.f32 %v492_v15, %v472_v7  ;;  %v506_v12 = vmul.f32 %v498_v49, %v473_v45  ;;  %v521_v63 = vld [vmem:[#allocation2 + $0x228] sm:$0xff]  ;;  %v416_v42 = vld [vmem:[#allocation2 + $0x180] sm:$0xff] }
 0x18b   :  { %v417_v7 = vld [vmem:[#allocation2 + $0x188] sm:$0xff]  ;;  %v445_v45 = vsel %vm440_vm7, %v1292_v48, %v1508_v37  ;;  %v493_v46 = vsel %vm490_vm6, %v479_v47, %v1365_v6 }
 0x18c   :  { %v513_v9 = vadd.f32 %v505_v60, %v463_v62  ;;  %v514_v19 = vadd.f32 %v506_v12, %v464_v53  ;;  %v467_v53 = vld [vmem:[#allocation2 + $0x1c8] sm:$0xff]  ;;  %v449_v41 = vmul.f32 %v445_v45, %v416_v42 }
 0x18e   :  { %v563_v29 = vadd.f32 %v555_v25, %v513_v9  ;;  %v564_v26 = vadd.f32 %v556_v55, %v514_v19  ;;  %v500_v9 = vmul.f32 %v493_v46, %v467_v53 }
 0x18f   :  { %v537_v0 = vpop.permute.xlu1 %536 }
 0x190   :  { %v1529_v13 = vpop.permute.xlu0 %532  ;;  %v596_v59 = vpop.permute.xlu2 %595  ;;  %v547_v32 = vsel %vm540_vm8, %v537_v0, %v1214_v14 }
 0x191   :  { %v541_v17 = vsel %vm540_vm8, %v1529_v13, %v537_v0  ;;  %v552_v15 = vmul.f32 %v547_v32, %v519_v24 }
 0x192   :  { %v551_v49 = vmul.f32 %v541_v17, %v518_v40 }
 0x197   :  { %v575_v10 = vpop.permute.xlu1 %574 }
 0x198   :  { %v481_v33 = vpop.permute.xlu0 %480  ;;  %v583_v27 = vmul.f32 %v575_v10, %v563_v29  ;;  %v584_v28 = vmul.f32 %v575_v10, %v564_v26  ;;  %v516_v26 = vld [vmem:[#allocation2 + $0x200] sm:$0xff] }
 0x199   :  { %v494_v5 = vsel %vm490_vm6, %v481_v33, %v1458_v50  ;;  %v496_v58 = vsel %vm490_vm6, %v1416_v3, %v481_v33  ;;  %v443_v3 = vsel %vm440_vm7, %v1508_v37, %v1318_v61  ;;  %v495_v61 = vsel %vm490_vm6, %v1310_v57, %v479_v47  ;;  %v466_v37 = vld [vmem:[#allocation2 + $0x1c0] sm:$0xff]  ;;  %v517_v33 = vld [vmem:[#allocation2 + $0x208] sm:$0xff] }
 0x19a   :  { %v604_v30 = vadd.f32 %v596_v59, %v583_v27  ;;  %v605_v51 = vadd.f32 %v596_v59, %v584_v28  ;;  %v503_v23 = vmul.f32 %v496_v58, %v470_v35  ;;  %v504_v8 = vmul.f32 %v494_v5, %v471_v36 }
 0x19b   :  { %v450_v44 = vmul.f32 %v443_v3, %v417_v7  ;;  %v560_v57 = vadd.f32 %v552_v15, %v1408_v54  ;;  %v559_v47 = vadd.f32 %v551_v49, %v1410_v21  ;;  %v499_v16 = vmul.f32 %v495_v61, %v466_v37  ;;  %v915_v49 = vld [vmem:[%s1903_s6] sm:$0xff] }
 0x19c   :  { %v612_v43 = vmax.f32 %v604_v30, 0.0  ;;  %v613_v38 = vmax.f32 %v605_v51, 0.0  ;;  %v511_v60 = vadd.f32 %v503_v23, %v1511_v11  ;;  %v512_v12 = vadd.f32 %v504_v8, %v1499_v20 }
 0x19d   :  { %v457_v11 = vadd.f32 %v449_v41, %v1384_v31  ;;  %v458_v20 = vadd.f32 %v450_v44, %v1357_v34  ;;  %v717_v44 = vld [vmem:[%s1902_s5 + $0x8] sm:$0xff] }
 0x19e   :  { %v620_v39 = vmin.f32 %v612_v43, 6.0  ;;  %v621_v50 = vmin.f32 %v613_v38, 6.0 }
 0x19f   :  { %v570_v2 = vpop.permute.xlu1 %569  ;;  %v507_v51 = vadd.f32 %v499_v16, %v457_v11  ;;  %v508_v35 = vadd.f32 %v500_v9, %v458_v20  ;;  %v968_v9 = vld [vmem:[%s1902_s5 + $0x28] sm:$0xff] }
 0x1a0   :  { %v531_v52 = vpop.permute.xlu0 %530  ;;  %681 = vmatpush.msrb.mxu2 %v620_v39  ;;  %701 = vmatpush.msrb.mxu3 %v621_v50  ;;  %v579_v55 = vmul.f32 %v570_v2, %v559_v47  ;;  %v580_v25 = vmul.f32 %v570_v2, %v560_v57  ;;  %v964_v47 = vld [vmem:[%s1902_s5 + $0x88] sm:$0xff] }
 0x1a1   :  { %v544_v62 = vsel %vm540_vm8, %v531_v52, %v1513_v1  ;;  %v546_v48 = vsel %vm540_vm8, %v1456_v22, %v531_v52  ;;  %v995_v52 = vld [vmem:[%s1903_s6 + $0x8] sm:$0xff] }
 0x1a2   :  { %v553_v0 = vmul.f32 %v546_v48, %v520_v56  ;;  %v554_v6 = vmul.f32 %v544_v62, %v521_v63 }
 0x1a4   :  { %v561_v4 = vadd.f32 %v553_v0, %v511_v60  ;;  %v562_v1 = vadd.f32 %v554_v6, %v512_v12 }
 0x1a6   :  { %v581_v19 = vmul.f32 %v575_v10, %v561_v4  ;;  %v582_v22 = vmul.f32 %v575_v10, %v562_v1 }
 0x1a7   :  { %v591_v29 = vpop.permute.xlu1 %590 }
 0x1a8   :  { %v529_v27 = vpop.permute.xlu0 %528  ;;  %v602_v28 = vadd.f32 %v596_v59, %v581_v19  ;;  %v603_v54 = vadd.f32 %v596_v59, %v582_v22  ;;  %v600_v30 = vadd.f32 %v591_v29, %v579_v55  ;;  %v601_v21 = vadd.f32 %v591_v29, %v580_v25 }
 0x1a9   :  { %v543_v10 = vsel %vm540_vm8, %v529_v27, %v1529_v13  ;;  %v545_v31 = vsel %vm540_vm8, %v1214_v14, %v529_v27  ;;  %v622_v14 = vld [vmem:[%s1901_s4] sm:$0xff]  ;;  %v965_v27 = vld [vmem:[%s1902_s5 + $0x90] sm:$0xff] }
 0x1aa   :  { %v549_v36 = vmul.f32 %v545_v31, %v516_v26  ;;  %v550_v34 = vmul.f32 %v543_v10, %v517_v33  ;;  %v610_v5 = vmax.f32 %v602_v28, 0.0  ;;  %v611_v58 = vmax.f32 %v603_v54, 0.0  ;;  %v718_v28 = vld [vmem:[%s1902_s5 + $0x10] sm:$0xff] }
 0x1ab   :  { %v608_v43 = vmax.f32 %v600_v30, 0.0  ;;  %v609_v38 = vmax.f32 %v601_v21, 0.0  ;;  %v969_v30 = vld [vmem:[%s1902_s5 + $0x30] sm:$0xff] }
 0x1ac   :  { %v557_v24 = vadd.f32 %v549_v36, %v507_v51  ;;  %v558_v59 = vadd.f32 %v550_v34, %v508_v35  ;;  %v618_v32 = vmin.f32 %v610_v5, 6.0  ;;  %v619_v40 = vmin.f32 %v611_v58, 6.0  ;;  %v716_v34 = vld [vmem:[%s1902_s5] sm:$0xff] }
 0x1ad   :  { %v616_v17 = vmin.f32 %v608_v43, 6.0  ;;  %v617_v23 = vmin.f32 %v609_v38, 6.0  ;;  %v963_v38 = vld [vmem:[%s1902_s5 + $0x80] sm:$0xff] }
 0x1ae   :  { %641 = vmatpush.msrb.mxu0 %v618_v32  ;;  %661 = vmatpush.msrb.mxu1 %v619_v40  ;;  %v577_v8 = vmul.f32 %v570_v2, %v557_v24  ;;  %v578_v13 = vmul.f32 %v570_v2, %v558_v59  ;;  %v967_v40 = vld [vmem:[%s1902_s5 + $0x20] sm:$0xff] }
 0x1af   :  { %682 = vmatpush.msrb.mxu2 %v616_v17  ;;  %702 = vmatpush.msrb.mxu3 %v617_v23 }
 0x1b0   :  { %v598_v39 = vadd.f32 %v591_v29, %v577_v8  ;;  %v599_v50 = vadd.f32 %v591_v29, %v578_v13  ;;  %961 = vmatmul.msk.f32.vlgmr.msrb.gmra.mxu2 %vm623_vm9, %v622_v14  ;;  %962 = vmatmul.msk.f32.vlgmr.msrb.gmra.mxu3 %vm623_vm9, %v622_v14  ;;  %v971_v8 = vld [vmem:[%s1902_s5 + $0x40] sm:$0xff] }
 0x1b2   :  { %v606_v3 = vmax.f32 %v598_v39, 0.0  ;;  %v607_v56 = vmax.f32 %v599_v50, 0.0 }
 0x1b4   :  { %v614_v63 = vmin.f32 %v606_v3, 6.0  ;;  %v615_v42 = vmin.f32 %v607_v56, 6.0  ;;  %v975_v3 = vld [vmem:[%s1902_s5 + $0x60] sm:$0xff] }
 0x1b6   :  { %642 = vmatpush.msrb.mxu0 %v614_v63  ;;  %662 = vmatpush.msrb.mxu1 %v615_v42 }
 0x1b7   :  { %960 = vmatmul.msk.f32.vlgmr.msrb.gmra.mxu1 %vm623_vm9, %v622_v14  ;;  %959 = vmatmul.msk.f32.vlgmr.msrb.gmra.mxu0 %vm623_vm9, %v622_v14 }
 0x233   :  { %v684_v45 = vpop.f32.mrf.mxu2  ;;  %v1610_v15 = vpop.f32.mrf.mxu3 }
 0x234   :  { %v664_v2 = vpop.f32.mrf.mxu1  ;;  %v1592_v7 = vpop.f32.mrf.mxu0  ;;  %v714_v31 = vmul.f32 %v965_v27, %v684_v45  ;;  %v966_v27 = vld [vmem:[%s1902_s5 + $0x98] sm:$0xff] }
 0x235   :  { %772 = vrot.lane.b32.xlu2 %v664_v2, %s1047_s21  ;;  %747 = vrot.lane.b32.xlu1 %v664_v2, %s1045_s20  ;;  %v713_v19 = vmul.f32 %v964_v47, %v664_v2  ;;  %v712_v17 = vmul.f32 %v963_v38, %v1592_v7  ;;  %v719_v47 = vld [vmem:[%s1902_s5 + $0x18] sm:$0xff] }
 0x236   :  { %722 = vrot.lane.b32.xlu0 %v664_v2, %s1044_s19 }
 0x23d   :  { %847 = vrot.lane.b32.xlu2 %v664_v2, %s1049_s23  ;;  %822 = vrot.lane.b32.xlu1 %v664_v2, %s1050_s24 }
 0x23e   :  { %797 = vrot.lane.b32.xlu0 %v664_v2, %s1048_s22 }
 0x245   :  { %897 = vrot.lane.b32.xlu1 %v664_v2, %s1046_s1  ;;  %720 = vrot.lane.b32.xlu2 %v1592_v7, %s1044_s19 }
 0x246   :  { %872 = vrot.lane.b32.xlu0 %v664_v2, %s1051_s25 }
 0x24d   :  { %770 = vrot.lane.b32.xlu1 %v1592_v7, %s1047_s21  ;;  %795 = vrot.lane.b32.xlu2 %v1592_v7, %s1048_s22 }
 0x24e   :  { %745 = vrot.lane.b32.xlu0 %v1592_v7, %s1045_s20 }
 0x255   :  { %845 = vrot.lane.b32.xlu1 %v1592_v7, %s1049_s23  ;;  %870 = vrot.lane.b32.xlu2 %v1592_v7, %s1051_s25 }
 0x256   :  { %820 = vrot.lane.b32.xlu0 %v1592_v7, %s1050_s24 }
 0x25d   :  { %724 = vrot.lane.b32.xlu1 %v684_v45, %s1044_s19  ;;  %726 = vrot.lane.b32.xlu2 %v1610_v15, %s1044_s19 }
 0x25e   :  { %895 = vrot.lane.b32.xlu0 %v1592_v7, %s1046_s1  ;;  %v979_v7 = vld [vmem:[%s1902_s5 + $0xa0] sm:$0xff] }
 0x265   :  { %776 = vrot.lane.b32.xlu1 %v1610_v15, %s1047_s21  ;;  %749 = vrot.lane.b32.xlu2 %v684_v45, %s1045_s20 }
 0x266   :  { %751 = vrot.lane.b32.xlu0 %v1610_v15, %s1045_s20 }
 0x26d   :  { %799 = vrot.lane.b32.xlu1 %v684_v45, %s1048_s22  ;;  %801 = vrot.lane.b32.xlu2 %v1610_v15, %s1048_s22 }
 0x26e   :  { %774 = vrot.lane.b32.xlu0 %v684_v45, %s1047_s21 }
 0x275   :  { %851 = vrot.lane.b32.xlu1 %v1610_v15, %s1049_s23  ;;  %824 = vrot.lane.b32.xlu2 %v684_v45, %s1050_s24 }
 0x276   :  { %826 = vrot.lane.b32.xlu0 %v1610_v15, %s1050_s24 }
 0x27d   :  { %874 = vrot.lane.b32.xlu1 %v684_v45, %s1051_s25  ;;  %876 = vrot.lane.b32.xlu2 %v1610_v15, %s1051_s25 }
 0x27e   :  { %849 = vrot.lane.b32.xlu0 %v684_v45, %s1049_s23 }
 0x285   :  { %918 = vperm.xlu1 %1008, %v915_v49   ;;  %899 = vrot.lane.b32.xlu2 %v684_v45, %s1046_s1 }
 0x286   :  { %901 = vrot.lane.b32.xlu0 %v1610_v15, %s1046_s1 }
 0x28d   :  { %929 = vperm.xlu2 %1009, %v995_v52  }
 0x28f   :  { %v1644_v46 = vpop.permute.xlu2 %772 }
 0x297   :  { %v1646_v61 = vpop.permute.xlu2 %847 }
 0x29f   :  { %v721_v62 = vpop.permute.xlu2 %720 }
 0x2a7   :  { %v748_v48 = vpop.permute.xlu1 %747  ;;  %v1648_v53 = vpop.permute.xlu2 %795 }
 0x2a8   :  { %v723_v37 = vpop.permute.xlu0 %722 }
 0x2a9   :  { %v730_v57 = vsel %vm190_vm1, %v721_v62, %v723_v37 }
 0x2aa   :  { %v733_v1 = vmul.f32 %v730_v57, %v717_v44  ;;  %v973_v44 = vld [vmem:[%s1902_s5 + $0x50] sm:$0xff] }
 0x2ac   :  { %v737_v25 = vadd.f32 %v733_v1, %v713_v19 }
 0x2af   :  { %v1650_v60 = vpop.permute.xlu1 %822  ;;  %v1654_v0 = vpop.permute.xlu2 %870 }
 0x2b0   :  { %v1652_v12 = vpop.permute.xlu0 %797 }
 0x2b7   :  { %v1656_v6 = vpop.permute.xlu1 %897  ;;  %v727_v4 = vpop.permute.xlu2 %726 }
 0x2b8   :  { %v1658_v41 = vpop.permute.xlu0 %872  ;;  %v731_v5 = vsel %vm190_vm1, %v727_v4, %v721_v62  ;;  %v983_v62 = vld [vmem:[%s1902_s5 + $0xc0] sm:$0xff] }
 0x2b9   :  { %v732_v59 = vmul.f32 %v731_v5, %v716_v34 }
 0x2bb   :  { %v736_v39 = vadd.f32 %v732_v59, %v712_v17 }
 0x2bf   :  { %v1668_v16 = vpop.permute.xlu1 %770  ;;  %v750_v29 = vpop.permute.xlu2 %749 }
 0x2c0   :  { %v746_v22 = vpop.permute.xlu0 %745  ;;  %v754_v21 = vsel %vm240_vm2, %v748_v48, %v750_v29 }
 0x2c1   :  { %v755_v55 = vsel %vm240_vm2, %v746_v22, %v748_v48  ;;  %v759_v58 = vmul.f32 %v969_v30, %v754_v21 }
 0x2c2   :  { %v758_v11 = vmul.f32 %v968_v9, %v755_v55 }
 0x2c4   :  { %v1675_v20 = vadd.f32 %v758_v11, %v737_v25 }
 0x2c7   :  { %v1677_v26 = vpop.permute.xlu1 %845  ;;  %v1696_v10 = vpop.permute.xlu2 %801 }
 0x2c8   :  { %v1679_v33 = vpop.permute.xlu0 %820  ;;  %v806_v56 = vsel %vm340_vm4, %v1696_v10, %v1648_v53  ;;  %v855_v48 = vsel %vm440_vm7, %v1677_v26, %v1646_v61 }
 0x2c9   :  { %v830_v45 = vsel %vm390_vm5, %v1679_v33, %v1650_v60  ;;  %v807_v49 = vmul.f32 %v975_v3, %v806_v56  ;;  %v857_v11 = vmul.f32 %v983_v62, %v855_v48 }
 0x2ca   :  { %v832_v57 = vmul.f32 %v979_v7, %v830_v45 }
 0x2cf   :  { %v725_v54 = vpop.permute.xlu1 %724  ;;  %v825_v63 = vpop.permute.xlu2 %824 }
 0x2d0   :  { %v729_v51 = vsel %vm190_vm1, %v723_v37, %v725_v54  ;;  %v1694_v35 = vpop.permute.xlu0 %895  ;;  %v728_v1 = vsel %vm190_vm1, %v725_v54, %v727_v4  ;;  %v970_v4 = vld [vmem:[%s1902_s5 + $0x38] sm:$0xff]  ;;  %v829_v3 = vsel %vm390_vm5, %v1650_v60, %v825_v63 }
 0x2d1   :  { %v734_v36 = vmul.f32 %v729_v51, %v718_v28  ;;  %v735_v21 = vmul.f32 %v728_v1, %v719_v47  ;;  %v905_v47 = vsel %vm540_vm8, %v1694_v35, %v1656_v6 }
 0x2d3   :  { %v738_v43 = vadd.f32 %v734_v36, %v714_v31  ;;  %v974_v31 = vld [vmem:[%s1902_s5 + $0x58] sm:$0xff] }
 0x2d5   :  { %v763_v24 = vadd.f32 %v759_v58, %v738_v43  ;;  %v715_v58 = vmul.f32 %v966_v27, %v1610_v15  ;;  %v978_v15 = vld [vmem:[%s1902_s5 + $0x78] sm:$0xff] }
 0x2d7   :  { %v777_v32 = vpop.permute.xlu1 %776  ;;  %v877_v38 = vpop.permute.xlu2 %876  ;;  %v739_v17 = vadd.f32 %v735_v21, %v715_v58 }
 0x2d8   :  { %v752_v23 = vpop.permute.xlu0 %751  ;;  %v781_v13 = vsel %vm290_vm3, %v777_v32, %v1668_v16 }
 0x2d9   :  { %v756_v14 = vsel %vm240_vm2, %v752_v23, %v746_v22  ;;  %v782_v42 = vmul.f32 %v971_v8, %v781_v13  ;;  %v977_v22 = vld [vmem:[%s1902_s5 + $0x70] sm:$0xff]  ;;  %v753_v28 = vsel %vm240_vm2, %v750_v29, %v752_v23  ;;  %v972_v29 = vld [vmem:[%s1902_s5 + $0x48] sm:$0xff] }
 0x2da   :  { %v757_v50 = vmul.f32 %v967_v40, %v756_v14  ;;  %v760_v43 = vmul.f32 %v970_v4, %v753_v28  ;;  %v780_v40 = vsel %vm290_vm3, %v1668_v16, %v1644_v46  ;;  %v976_v16 = vld [vmem:[%s1902_s5 + $0x68] sm:$0xff] }
 0x2db   :  { %v783_v13 = vmul.f32 %v972_v29, %v780_v40 }
 0x2dc   :  { %v761_v2 = vadd.f32 %v757_v50, %v736_v39  ;;  %v982_v39 = vld [vmem:[%s1902_s5 + $0xb8] sm:$0xff]  ;;  %v805_v50 = vsel %vm340_vm4, %v1648_v53, %v1652_v12  ;;  %v987_v53 = vld [vmem:[%s1902_s5 + $0xe0] sm:$0xff] }
 0x2dd   :  { %v808_v45 = vmul.f32 %v976_v16, %v805_v50 }
 0x2de   :  { %v786_v52 = vadd.f32 %v782_v42, %v761_v2  ;;  %v981_v42 = vld [vmem:[%s1902_s5 + $0xb0] sm:$0xff] }
 0x2df   :  { %v800_v37 = vpop.permute.xlu1 %799 }
 0x2e0   :  { %v811_v9 = vadd.f32 %v807_v49, %v786_v52  ;;  %v775_v19 = vpop.permute.xlu0 %774  ;;  %v804_v55 = vsel %vm340_vm4, %v1652_v12, %v800_v37  ;;  %v803_v14 = vsel %vm340_vm4, %v800_v37, %v1696_v10  ;;  %v980_v10 = vld [vmem:[%s1902_s5 + $0xa8] sm:$0xff]  ;;  %v880_v12 = vsel %vm490_vm6, %v1654_v0, %v1658_v41  ;;  %v900_v49 = vpop.permute.xlu2 %899  ;;  %v985_v37 = vld [vmem:[%s1902_s5 + $0xd0] sm:$0xff] }
 0x2e1   :  { %v779_v25 = vsel %vm290_vm3, %v1644_v46, %v775_v19  ;;  %v809_v51 = vmul.f32 %v977_v22, %v804_v55  ;;  %v778_v36 = vsel %vm290_vm3, %v775_v19, %v777_v32  ;;  %v810_v60 = vmul.f32 %v978_v15, %v803_v14 }
 0x2e2   :  { %v836_v54 = vadd.f32 %v832_v57, %v811_v9  ;;  %v784_v30 = vmul.f32 %v973_v44, %v779_v25  ;;  %v785_v23 = vmul.f32 %v974_v31, %v778_v36  ;;  %v882_v44 = vmul.f32 %v987_v53, %v880_v12  ;;  %v991_v57 = vld [vmem:[%s1902_s5 + $0x100] sm:$0xff]  ;;  %v986_v9 = vld [vmem:[%s1902_s5 + $0xd8] sm:$0xff]  ;;  %v988_v25 = vld [vmem:[%s1902_s5 + $0xe8] sm:$0xff] }
 0x2e3   :  { %v907_v21 = vmul.f32 %v991_v57, %v905_v47  ;;  %v1011_v53 = vld [vmem:[%s1897_s0] sm:$0xff] }
 0x2e4   :  { %v788_v34 = vadd.f32 %v784_v30, %v763_v24  ;;  %v861_v5 = vadd.f32 %v857_v11, %v836_v54  ;;  %v764_v24 = vadd.f32 %v760_v43, %v739_v17 }
 0x2e6   :  { %v813_v59 = vadd.f32 %v809_v51, %v788_v34  ;;  %v789_v56 = vadd.f32 %v785_v23, %v764_v24  ;;  %v886_v30 = vadd.f32 %v882_v44, %v861_v5  ;;  %v992_v51 = vld [vmem:[%s1902_s5 + $0x108] sm:$0xff]  ;;  %v990_v34 = vld [vmem:[%s1902_s5 + $0xf8] sm:$0xff]  ;;  %v989_v5 = vld [vmem:[%s1902_s5 + $0xf0] sm:$0xff] }
 0x2e7   :  { %v852_v8 = vpop.permute.xlu1 %851 }
 0x2e8   :  { %v827_v32 = vpop.permute.xlu0 %826  ;;  %v814_v52 = vadd.f32 %v810_v60, %v789_v56  ;;  %v856_v19 = vsel %vm440_vm7, %v852_v8, %v1677_v26  ;;  %v911_v23 = vadd.f32 %v907_v21, %v886_v30 }
 0x2e9   :  { %v831_v46 = vsel %vm390_vm5, %v827_v32, %v1679_v33  ;;  %v787_v33 = vadd.f32 %v783_v13, %v1675_v20  ;;  %v828_v2 = vsel %vm390_vm5, %v825_v63, %v827_v32  ;;  %v833_v20 = vmul.f32 %v980_v10, %v829_v3  ;;  %v984_v63 = vld [vmem:[%s1902_s5 + $0xc8] sm:$0xff]  ;;  %v994_v13 = vld [vmem:[%s1902_s5 + $0x118] sm:$0xff] }
 0x2ea   :  { %v835_v7 = vmul.f32 %v982_v39, %v831_v46  ;;  %v834_v62 = vmul.f32 %v981_v42, %v828_v2  ;;  %v860_v31 = vmul.f32 %v986_v9, %v856_v19  ;;  %v930_v39 = vpop.permute.xlu2 %929 }
 0x2eb   :  { %v812_v1 = vadd.f32 %v808_v45, %v787_v33  ;;  %v1012_v45 = vld [vmem:[%s1897_s0 + $0x8] sm:$0xff] }
 0x2ec   :  { %v839_v55 = vadd.f32 %v835_v7, %v814_v52  ;;  %v838_v36 = vadd.f32 %v834_v62, %v813_v59  ;;  %v1013_v62 = vld [vmem:[%s1897_s0 + $0x10] sm:$0xff] }
 0x2ed   :  { %v837_v28 = vadd.f32 %v833_v20, %v812_v1 }
 0x2ef   :  { %v875_v48 = vpop.permute.xlu1 %874 }
 0x2f0   :  { %v850_v22 = vpop.permute.xlu0 %849  ;;  %v879_v11 = vsel %vm490_vm6, %v1658_v41, %v875_v48  ;;  %v904_v41 = vsel %vm540_vm8, %v1656_v6, %v900_v49  ;;  %v878_v58 = vsel %vm490_vm6, %v875_v48, %v877_v38  ;;  %v864_v6 = vadd.f32 %v860_v31, %v839_v55 }
 0x2f1   :  { %v853_v27 = vsel %vm440_vm7, %v850_v22, %v852_v8  ;;  %v854_v4 = vsel %vm440_vm7, %v1646_v61, %v850_v22  ;;  %v881_v61 = vsel %vm490_vm6, %v877_v38, %v1654_v0  ;;  %v883_v43 = vmul.f32 %v988_v25, %v879_v11  ;;  %v993_v0 = vld [vmem:[%s1902_s5 + $0x110] sm:$0xff] }
 0x2f2   :  { %v858_v54 = vmul.f32 %v984_v63, %v854_v4  ;;  %v859_v26 = vmul.f32 %v985_v37, %v853_v27  ;;  %v908_v59 = vmul.f32 %v992_v51, %v904_v41  ;;  %v885_v8 = vmul.f32 %v990_v34, %v881_v61  ;;  %v1014_v63 = vld [vmem:[%s1897_s0 + $0x18] sm:$0xff] }
 0x2f3   :  { %v884_v32 = vmul.f32 %v989_v5, %v878_v58 }
 0x2f4   :  { %v862_v29 = vadd.f32 %v858_v54, %v837_v28  ;;  %v863_v40 = vadd.f32 %v859_v26, %v838_v36  ;;  %v889_v16 = vadd.f32 %v885_v8, %v864_v6 }
 0x2f6   :  { %v887_v17 = vadd.f32 %v883_v43, %v862_v29  ;;  %v888_v46 = vadd.f32 %v884_v32, %v863_v40 }
 0x2f7   :  { %v919_v24 = vpop.permute.xlu1 %918 }
 0x2f8   :  { %v912_v15 = vadd.f32 %v908_v59, %v887_v17  ;;  %v921_v38 = vmul.f32 %v919_v24, %v911_v23  ;;  %v902_v14 = vpop.permute.xlu0 %901 }
 0x2f9   :  { %v903_v50 = vsel %vm540_vm8, %v900_v49, %v902_v14  ;;  %v906_v10 = vsel %vm540_vm8, %v902_v14, %v1694_v35 }
 0x2fa   :  { %v922_v3 = vmul.f32 %v919_v24, %v912_v15  ;;  %v932_v56 = vadd.f32 %v930_v39, %v921_v38  ;;  %v909_v33 = vmul.f32 %v993_v0, %v903_v50  ;;  %v910_v42 = vmul.f32 %v994_v13, %v906_v10 }
 0x2fc   :  { %v933_v2 = vadd.f32 %v930_v39, %v922_v3  ;;  %v936_v12 = vadd.f32 %v1011_v53, %v932_v56  ;;  %v913_v60 = vadd.f32 %v909_v33, %v888_v46  ;;  %v914_v7 = vadd.f32 %v910_v42, %v889_v16 }
 0x2fe   :  { %v937_v20 = vadd.f32 %v1012_v45, %v933_v2  ;;  %940 = vst [vmem:[%s1904_s7] sm:$0xff] %v936_v12  ;;  %v923_v18 = vmul.f32 %v919_v24, %v913_v60  ;;  %v924_v35 = vmul.f32 %v919_v24, %v914_v7 }
 0x300   :  { %941 = vst [vmem:[%s1904_s7 + $0x8] sm:$0xff] %v937_v20  ;;  %v934_v49 = vadd.f32 %v930_v39, %v923_v18  ;;  %v935_v52 = vadd.f32 %v930_v39, %v924_v35 }
 0x302   :  { %v938_v48 = vadd.f32 %v1013_v62, %v934_v49  ;;  %v939_v37 = vadd.f32 %v1014_v63, %v935_v52 }
 0x304   :  { %942 = vst [vmem:[%s1904_s7 + $0x10] sm:$0xff] %v938_v48 }
 0x305   :  { %943 = vst [vmem:[%s1904_s7 + $0x18] sm:$0xff] %v939_v37 }
 0x306   :  { %948 = vsyncpa [#allocation3], 1 }

</bundles_post_ra>
